<compile_context>
chip_gen: v5e
topology: v5e:2x2
jax: 0.10.0
libtpu: 0.0.40
codegen_flags: <defaults>
</compile_context>

<pallas_src>
import jax
import jax.numpy as jnp
from jax.experimental import pallas as pl
from jax.experimental.pallas import tpu as pltpu


def lstm_kernel(gi_ref, w_hh_ref, w_fc_ref, b_fc_ref, out_ref):
    """Pure LSTM recurrence + fused final fc in ONE kernel invocation.

    gi_ref   : (T, B, 4*HP) f32   precomputed x @ W_ih^T + (b_ih + b_hh), gate-padded
    w_hh_ref : (HP, 4*HP)   bf16  W_hh^T, zero-padded rows and gate blocks
    w_fc_ref : (HP, 1)      f32   fc.weight^T, zero-padded rows
    b_fc_ref : (1, 1)       f32   fc.bias
    out_ref  : (B, 1)       f32   fc(h_T)
    """
    T, B, _ = gi_ref.shape
    HP = w_hh_ref.shape[0]

    def step(t, carry):
        h, c = carry
        # bf16 x bf16 -> f32 accumulate: single-pass MXU, shortest serial latency.
        gates = gi_ref[t] + jnp.dot(h.astype(jnp.bfloat16), w_hh_ref[...],
                                    preferred_element_type=jnp.float32)
        # TODO(synk): on v7x, route this through a (B, 4*HP) VMEM accumulator
        # (acc[...] = gi_ref[t]; acc[...] += dot(...)) to use the MRB in-place
        # accumulate; neutral on v5e/v6e (FIFO MRF), so not chip-gated here.
        # PyTorch gate order i, f, g, o; every slice is a full (8,128) vreg.
        i_g = jax.nn.sigmoid(gates[:, 0:HP])
        f_g = jax.nn.sigmoid(gates[:, HP:2 * HP])
        g_g = jnp.tanh(gates[:, 2 * HP:3 * HP])
        o_g = jax.nn.sigmoid(gates[:, 3 * HP:4 * HP])
        c_new = f_g * c + i_g * g_g
        h_new = o_g * jnp.tanh(c_new)
        return (h_new, c_new)

    h0 = jnp.zeros((B, HP), jnp.float32)
    c0 = jnp.zeros((B, HP), jnp.float32)
    # Full unroll only while T is small; bounded unroll keeps vreg pressure in
    # check (and LLO visibility) once T grows.
    h_last, _ = jax.lax.fori_loop(0, T, step, (h0, c0),
                                  unroll=True if T <= 16 else 4)

    # Fused fc(out[:, -1]); written once, negligible masked store.
    out_ref[...] = (jnp.dot(h_last, w_fc_ref[...],
                            preferred_element_type=jnp.float32)
                    + b_fc_ref[...])


def _pad_gate_blocks(mat, H, HP):
    """mat: (K, 4*H) with gate blocks [i|f|g|o] of width H along axis 1.
    Returns (K, 4*HP) with each block zero-padded to width HP (exact)."""
    blocks = [jnp.pad(mat[:, k * H:(k + 1) * H], ((0, 0), (0, HP - H)))
              for k in range(4)]
    return jnp.concatenate(blocks, axis=1)


def lstm_model_forward(x, params, *, hidden=64):
    """x: (B, T, 1) batch_first like PyTorch. Returns (B, 1) = fc(h_T)."""
    B, T, I = x.shape
    assert I == 1, "nn.LSTM(1, 64): input size is 1"
    w_ih, w_hh, b_ih, b_hh, w_fc, b_fc = params
    H = hidden
    HP = max(128, -(-H // 128) * 128)          # pad hidden to full 128-lane vregs

    # Keep batch a multiple of 8 sublanes (zero rows, exact).
    BP = -(-B // 8) * 8
    if BP != B:
        x = jnp.pad(x, ((0, BP - B), (0, 0), (0, 0)))

    # ---- Host-side parameter prep (all zero padding is exact) ----
    # Input projection is recurrence-free and I == 1: do it here, lane-dense.
    w_ih_t = _pad_gate_blocks(w_ih.T, H, HP)                        # (1, 4*HP)
    b_all = _pad_gate_blocks((b_ih + b_hh).reshape(1, -1), H, HP)   # (1, 4*HP) folded bias
    x_tm = jnp.transpose(x, (1, 0, 2)).reshape(T * BP, 1)           # time-major
    gi = (x_tm * w_ih_t + b_all).reshape(T, BP, 4 * HP)             # (T, BP, 4*HP)
    # TODO(synk): for long sequences (T*BP*4*HP*4 bytes approaching the 32 MiB
    # scoped / 64 MiB v7x VMEM), stream gi in time-chunks via a grid axis
    # marked "arbitrary" with h, c carried in VMEM scratch, and set
    # pltpu.CompilerParams(vmem_limit_bytes=...) with headroom.

    # Recurrence weights: transpose, pad gate blocks + rows to HP, cast bf16.
    w_hh_t = jnp.pad(_pad_gate_blocks(w_hh.T, H, HP), ((0, HP - H), (0, 0)))
    w_hh_t = w_hh_t.astype(jnp.bfloat16)                            # (HP, 4*HP)

    w_fc_t = jnp.pad(w_fc.T, ((0, HP - H), (0, 0)))                 # (HP, 1)
    b_fc2 = b_fc.reshape(1, 1)                                      # (1, 1)

    vmem = pl.BlockSpec(memory_space=pltpu.MemorySpace.VMEM)
    # TODO(synk): if B grows past one MXU tile, add a leading batch grid axis
    # (block a multiple of 8) marked "parallel" so v7x's second TensorCore
    # runs an independent batch shard of the recurrence.
    out = pl.pallas_call(
        lstm_kernel,
        out_shape=jax.ShapeDtypeStruct((BP, 1), jnp.float32),
        in_specs=[vmem] * 4,
        out_specs=vmem,
    )(gi, w_hh_t, w_fc_t, b_fc2)
    return out[:B]


def init_params(key, input_size=1, hidden=64):
    """Deterministic init matching PyTorch LSTM shapes (uniform(-1/sqrt(H), 1/sqrt(H)))."""
    k = 1.0 / jnp.sqrt(hidden)
    keys = jax.random.split(key, 6)
    w_ih = jax.random.uniform(keys[0], (4 * hidden, input_size), jnp.float32, -k, k)
    w_hh = jax.random.uniform(keys[1], (4 * hidden, hidden), jnp.float32, -k, k)
    b_ih = jax.random.uniform(keys[2], (4 * hidden,), jnp.float32, -k, k)
    b_hh = jax.random.uniform(keys[3], (4 * hidden,), jnp.float32, -k, k)
    w_fc = jax.random.uniform(keys[4], (1, hidden), jnp.float32, -k, k)
    b_fc = jax.random.uniform(keys[5], (1,), jnp.float32, -k, k)
    return (w_ih, w_hh, b_ih, b_hh, w_fc, b_fc)


def lstm_model_reference(x, params, *, hidden=64, matmul_dtype=jnp.float32):
    """Pure-JAX reference of the PyTorch forward (nn.LSTM + fc(out[:, -1])).

    matmul_dtype lets the reference mirror the kernel's bf16-input recurrence
    matmul (f32 accumulate) for a tight numerical check.
    """
    w_ih, w_hh, b_ih, b_hh, w_fc, b_fc = params
    B, T, I = x.shape
    h0 = jnp.zeros((B, hidden), jnp.float32)
    c0 = jnp.zeros((B, hidden), jnp.float32)
    w_hh_t = w_hh.T.astype(matmul_dtype)

    def step(carry, x_t):
        h, c = carry
        hh = jnp.dot(h.astype(matmul_dtype), w_hh_t,
                     preferred_element_type=jnp.float32)
        gates = x_t @ w_ih.T + (b_ih + b_hh) + hh
        i_g, f_g, g_g, o_g = jnp.split(gates, 4, axis=-1)
        c_new = jax.nn.sigmoid(f_g) * c + jax.nn.sigmoid(i_g) * jnp.tanh(g_g)
        h_new = jax.nn.sigmoid(o_g) * jnp.tanh(c_new)
        return (h_new, c_new), None

    (h_last, _), _ = jax.lax.scan(step, (h0, c0), jnp.transpose(x, (1, 0, 2)))
    return h_last @ w_fc.T + b_fc


if __name__ == "__main__":
    B, T, I, H = 8, 8, 1, 64
    key = jax.random.PRNGKey(0)
    kx, kp = jax.random.split(key)
    x = jax.random.normal(kx, (B, T, I), jnp.float32)
    params = init_params(kp, input_size=I, hidden=H)

    out = lstm_model_forward(x, params, hidden=H)
    out = jax.block_until_ready(out)
    assert out.shape == (B, 1)

    # Tight check vs a reference mirroring the kernel's bf16-input matmul
    # (f32 accumulate): isolates kernel bugs from expected bf16 rounding.
    ref_bf16 = lstm_model_reference(x, params, hidden=H, matmul_dtype=jnp.bfloat16)
    assert jnp.max(jnp.abs(out - ref_bf16)) < 2e-3, "Pallas LSTM mismatch vs bf16-matmul reference"

    # Loose sanity check vs the full-f32 PyTorch-semantics reference
    # (tolerance relaxed because of the intentional bf16 recurrence matmul).
    ref_f32 = lstm_model_reference(x, params, hidden=H)
    assert jnp.max(jnp.abs(out - ref_f32)) < 5e-2, "Pallas LSTM drifted from f32 reference"

    print("KERNEL_OK")
</pallas_src>

<mosaic_0001>
module attributes {stable_mosaic.version = 11 : i64} {
  func.func @lstm_kernel(%arg0: memref<8x8x512xf32, #tpu.memory_space<vmem>>, %arg1: memref<128x512xbf16, #tpu.memory_space<vmem>>, %arg2: memref<128x1xf32, #tpu.memory_space<vmem>>, %arg3: memref<1x1xf32, #tpu.memory_space<vmem>>, %arg4: memref<8x1xf32, #tpu.memory_space<vmem>>) attributes {dimension_semantics = [], scalar_prefetch = 0 : i64, scratch_operands = 0 : i64, tpu.core_type = #tpu.core_type<tc>} {
    %cst = arith.constant 0.000000e+00 : f32
    %0 = vector.broadcast %cst : f32 to vector<8x128xf32>
    %cst_0 = arith.constant 0.000000e+00 : f32
    %1 = vector.broadcast %cst_0 : f32 to vector<8x128xf32>
    %c0_i32 = arith.constant 0 : i32
    %2 = arith.index_cast %c0_i32 : i32 to index
    %c0 = arith.constant 0 : index
    %c0_1 = arith.constant 0 : index
    %3 = vector.load %arg0[%2, %c0, %c0_1] : memref<8x8x512xf32, #tpu.memory_space<vmem>>, vector<1x8x512xf32>
    %4 = vector.shape_cast %3 : vector<1x8x512xf32> to vector<8x512xf32>
    %5 = arith.truncf %0 : vector<8x128xf32> to vector<8x128xbf16>
    %c0_2 = arith.constant 0 : index
    %c0_3 = arith.constant 0 : index
    %6 = vector.load %arg1[%c0_2, %c0_3] : memref<128x512xbf16, #tpu.memory_space<vmem>>, vector<128x512xbf16>
    %cst_4 = arith.constant dense<0.000000e+00> : vector<8x512xf32>
    %7 = tpu.matmul %5, %6, %cst_4 {dimension_numbers = #tpu.dot_dimension_numbers<[1], [0], [0], [1], [0, 0, 1, 1], [], []>} : vector<8x128xbf16>, vector<128x512xbf16>, vector<8x512xf32> -> vector<8x512xf32>
    %8 = arith.addf %4, %7 : vector<8x512xf32>
    %9 = vector.extract_strided_slice %8 {offsets = [0, 0], sizes = [8, 128], strides = [1, 1]} : vector<8x512xf32> to vector<8x128xf32>
    %10 = arith.negf %9 : vector<8x128xf32>
    %11 = math.exp %10 : vector<8x128xf32>
    %cst_5 = arith.constant 1.000000e+00 : f32
    %12 = vector.broadcast %cst_5 : f32 to vector<8x128xf32>
    %13 = arith.addf %12, %11 : vector<8x128xf32>
    %14 = arith.divf %12, %13 : vector<8x128xf32>
    %15 = vector.extract_strided_slice %8 {offsets = [0, 128], sizes = [8, 128], strides = [1, 1]} : vector<8x512xf32> to vector<8x128xf32>
    %16 = arith.negf %15 : vector<8x128xf32>
    %17 = math.exp %16 : vector<8x128xf32>
    %cst_6 = arith.constant 1.000000e+00 : f32
    %18 = vector.broadcast %cst_6 : f32 to vector<8x128xf32>
    %19 = arith.addf %18, %17 : vector<8x128xf32>
    %20 = arith.divf %18, %19 : vector<8x128xf32>
    %21 = vector.extract_strided_slice %8 {offsets = [0, 256], sizes = [8, 128], strides = [1, 1]} : vector<8x512xf32> to vector<8x128xf32>
    %22 = math.tanh %21 : vector<8x128xf32>
    %23 = vector.extract_strided_slice %8 {offsets = [0, 384], sizes = [8, 128], strides = [1, 1]} : vector<8x512xf32> to vector<8x128xf32>
    %24 = arith.negf %23 : vector<8x128xf32>
    %25 = math.exp %24 : vector<8x128xf32>
    %cst_7 = arith.constant 1.000000e+00 : f32
    %26 = vector.broadcast %cst_7 : f32 to vector<8x128xf32>
    %27 = arith.addf %26, %25 : vector<8x128xf32>
    %28 = arith.divf %26, %27 : vector<8x128xf32>
    %29 = arith.mulf %20, %1 : vector<8x128xf32>
    %30 = arith.mulf %14, %22 : vector<8x128xf32>
    %31 = arith.addf %29, %30 : vector<8x128xf32>
    %32 = math.tanh %31 : vector<8x128xf32>
    %33 = arith.mulf %28, %32 : vector<8x128xf32>
    %c1_i32 = arith.constant 1 : i32
    %34 = arith.index_cast %c1_i32 : i32 to index
    %c0_8 = arith.constant 0 : index
    %c0_9 = arith.constant 0 : index
    %35 = vector.load %arg0[%34, %c0_8, %c0_9] : memref<8x8x512xf32, #tpu.memory_space<vmem>>, vector<1x8x512xf32>
    %36 = vector.shape_cast %35 : vector<1x8x512xf32> to vector<8x512xf32>
    %37 = arith.truncf %33 : vector<8x128xf32> to vector<8x128xbf16>
    %c0_10 = arith.constant 0 : index
    %c0_11 = arith.constant 0 : index
    %38 = vector.load %arg1[%c0_10, %c0_11] : memref<128x512xbf16, #tpu.memory_space<vmem>>, vector<128x512xbf16>
    %cst_12 = arith.constant dense<0.000000e+00> : vector<8x512xf32>
    %39 = tpu.matmul %37, %38, %cst_12 {dimension_numbers = #tpu.dot_dimension_numbers<[1], [0], [0], [1], [0, 0, 1, 1], [], []>} : vector<8x128xbf16>, vector<128x512xbf16>, vector<8x512xf32> -> vector<8x512xf32>
    %40 = arith.addf %36, %39 : vector<8x512xf32>
    %41 = vector.extract_strided_slice %40 {offsets = [0, 0], sizes = [8, 128], strides = [1, 1]} : vector<8x512xf32> to vector<8x128xf32>
    %42 = arith.negf %41 : vector<8x128xf32>
    %43 = math.exp %42 : vector<8x128xf32>
    %cst_13 = arith.constant 1.000000e+00 : f32
    %44 = vector.broadcast %cst_13 : f32 to vector<8x128xf32>
    %45 = arith.addf %44, %43 : vector<8x128xf32>
    %46 = arith.divf %44, %45 : vector<8x128xf32>
    %47 = vector.extract_strided_slice %40 {offsets = [0, 128], sizes = [8, 128], strides = [1, 1]} : vector<8x512xf32> to vector<8x128xf32>
    %48 = arith.negf %47 : vector<8x128xf32>
    %49 = math.exp %48 : vector<8x128xf32>
    %cst_14 = arith.constant 1.000000e+00 : f32
    %50 = vector.broadcast %cst_14 : f32 to vector<8x128xf32>
    %51 = arith.addf %50, %49 : vector<8x128xf32>
    %52 = arith.divf %50, %51 : vector<8x128xf32>
    %53 = vector.extract_strided_slice %40 {offsets = [0, 256], sizes = [8, 128], strides = [1, 1]} : vector<8x512xf32> to vector<8x128xf32>
    %54 = math.tanh %53 : vector<8x128xf32>
    %55 = vector.extract_strided_slice %40 {offsets = [0, 384], sizes = [8, 128], strides = [1, 1]} : vector<8x512xf32> to vector<8x128xf32>
    %56 = arith.negf %55 : vector<8x128xf32>
    %57 = math.exp %56 : vector<8x128xf32>
    %cst_15 = arith.constant 1.000000e+00 : f32
    %58 = vector.broadcast %cst_15 : f32 to vector<8x128xf32>
    %59 = arith.addf %58, %57 : vector<8x128xf32>
    %60 = arith.divf %58, %59 : vector<8x128xf32>
    %61 = arith.mulf %52, %31 : vector<8x128xf32>
    %62 = arith.mulf %46, %54 : vector<8x128xf32>
    %63 = arith.addf %61, %62 : vector<8x128xf32>
    %64 = math.tanh %63 : vector<8x128xf32>
    %65 = arith.mulf %60, %64 : vector<8x128xf32>
    %c2_i32 = arith.constant 2 : i32
    %66 = arith.index_cast %c2_i32 : i32 to index
    %c0_16 = arith.constant 0 : index
    %c0_17 = arith.constant 0 : index
    %67 = vector.load %arg0[%66, %c0_16, %c0_17] : memref<8x8x512xf32, #tpu.memory_space<vmem>>, vector<1x8x512xf32>
    %68 = vector.shape_cast %67 : vector<1x8x512xf32> to vector<8x512xf32>
    %69 = arith.truncf %65 : vector<8x128xf32> to vector<8x128xbf16>
    %c0_18 = arith.constant 0 : index
    %c0_19 = arith.constant 0 : index
    %70 = vector.load %arg1[%c0_18, %c0_19] : memref<128x512xbf16, #tpu.memory_space<vmem>>, vector<128x512xbf16>
    %cst_20 = arith.constant dense<0.000000e+00> : vector<8x512xf32>
    %71 = tpu.matmul %69, %70, %cst_20 {dimension_numbers = #tpu.dot_dimension_numbers<[1], [0], [0], [1], [0, 0, 1, 1], [], []>} : vector<8x128xbf16>, vector<128x512xbf16>, vector<8x512xf32> -> vector<8x512xf32>
    %72 = arith.addf %68, %71 : vector<8x512xf32>
    %73 = vector.extract_strided_slice %72 {offsets = [0, 0], sizes = [8, 128], strides = [1, 1]} : vector<8x512xf32> to vector<8x128xf32>
    %74 = arith.negf %73 : vector<8x128xf32>
    %75 = math.exp %74 : vector<8x128xf32>
    %cst_21 = arith.constant 1.000000e+00 : f32
    %76 = vector.broadcast %cst_21 : f32 to vector<8x128xf32>
    %77 = arith.addf %76, %75 : vector<8x128xf32>
    %78 = arith.divf %76, %77 : vector<8x128xf32>
    %79 = vector.extract_strided_slice %72 {offsets = [0, 128], sizes = [8, 128], strides = [1, 1]} : vector<8x512xf32> to vector<8x128xf32>
    %80 = arith.negf %79 : vector<8x128xf32>
    %81 = math.exp %80 : vector<8x128xf32>
    %cst_22 = arith.constant 1.000000e+00 : f32
    %82 = vector.broadcast %cst_22 : f32 to vector<8x128xf32>
    %83 = arith.addf %82, %81 : vector<8x128xf32>
    %84 = arith.divf %82, %83 : vector<8x128xf32>
    %85 = vector.extract_strided_slice %72 {offsets = [0, 256], sizes = [8, 128], strides = [1, 1]} : vector<8x512xf32> to vector<8x128xf32>
    %86 = math.tanh %85 : vector<8x128xf32>
    %87 = vector.extract_strided_slice %72 {offsets = [0, 384], sizes = [8, 128], strides = [1, 1]} : vector<8x512xf32> to vector<8x128xf32>
    %88 = arith.negf %87 : vector<8x128xf32>
    %89 = math.exp %88 : vector<8x128xf32>
    %cst_23 = arith.constant 1.000000e+00 : f32
    %90 = vector.broadcast %cst_23 : f32 to vector<8x128xf32>
    %91 = arith.addf %90, %89 : vector<8x128xf32>
    %92 = arith.divf %90, %91 : vector<8x128xf32>
    %93 = arith.mulf %84, %63 : vector<8x128xf32>
    %94 = arith.mulf %78, %86 : vector<8x128xf32>
    %95 = arith.addf %93, %94 : vector<8x128xf32>
    %96 = math.tanh %95 : vector<8x128xf32>
    %97 = arith.mulf %92, %96 : vector<8x128xf32>
    %c3_i32 = arith.constant 3 : i32
    %98 = arith.index_cast %c3_i32 : i32 to index
    %c0_24 = arith.constant 0 : index
    %c0_25 = arith.constant 0 : index
    %99 = vector.load %arg0[%98, %c0_24, %c0_25] : memref<8x8x512xf32, #tpu.memory_space<vmem>>, vector<1x8x512xf32>
    %100 = vector.shape_cast %99 : vector<1x8x512xf32> to vector<8x512xf32>
    %101 = arith.truncf %97 : vector<8x128xf32> to vector<8x128xbf16>
    %c0_26 = arith.constant 0 : index
    %c0_27 = arith.constant 0 : index
    %102 = vector.load %arg1[%c0_26, %c0_27] : memref<128x512xbf16, #tpu.memory_space<vmem>>, vector<128x512xbf16>
    %cst_28 = arith.constant dense<0.000000e+00> : vector<8x512xf32>
    %103 = tpu.matmul %101, %102, %cst_28 {dimension_numbers = #tpu.dot_dimension_numbers<[1], [0], [0], [1], [0, 0, 1, 1], [], []>} : vector<8x128xbf16>, vector<128x512xbf16>, vector<8x512xf32> -> vector<8x512xf32>
    %104 = arith.addf %100, %103 : vector<8x512xf32>
    %105 = vector.extract_strided_slice %104 {offsets = [0, 0], sizes = [8, 128], strides = [1, 1]} : vector<8x512xf32> to vector<8x128xf32>
    %106 = arith.negf %105 : vector<8x128xf32>
    %107 = math.exp %106 : vector<8x128xf32>
    %cst_29 = arith.constant 1.000000e+00 : f32
    %108 = vector.broadcast %cst_29 : f32 to vector<8x128xf32>
    %109 = arith.addf %108, %107 : vector<8x128xf32>
    %110 = arith.divf %108, %109 : vector<8x128xf32>
    %111 = vector.extract_strided_slice %104 {offsets = [0, 128], sizes = [8, 128], strides = [1, 1]} : vector<8x512xf32> to vector<8x128xf32>
    %112 = arith.negf %111 : vector<8x128xf32>
    %113 = math.exp %112 : vector<8x128xf32>
    %cst_30 = arith.constant 1.000000e+00 : f32
    %114 = vector.broadcast %cst_30 : f32 to vector<8x128xf32>
    %115 = arith.addf %114, %113 : vector<8x128xf32>
    %116 = arith.divf %114, %115 : vector<8x128xf32>
    %117 = vector.extract_strided_slice %104 {offsets = [0, 256], sizes = [8, 128], strides = [1, 1]} : vector<8x512xf32> to vector<8x128xf32>
    %118 = math.tanh %117 : vector<8x128xf32>
    %119 = vector.extract_strided_slice %104 {offsets = [0, 384], sizes = [8, 128], strides = [1, 1]} : vector<8x512xf32> to vector<8x128xf32>
    %120 = arith.negf %119 : vector<8x128xf32>
    %121 = math.exp %120 : vector<8x128xf32>
    %cst_31 = arith.constant 1.000000e+00 : f32
    %122 = vector.broadcast %cst_31 : f32 to vector<8x128xf32>
    %123 = arith.addf %122, %121 : vector<8x128xf32>
    %124 = arith.divf %122, %123 : vector<8x128xf32>
    %125 = arith.mulf %116, %95 : vector<8x128xf32>
    %126 = arith.mulf %110, %118 : vector<8x128xf32>
    %127 = arith.addf %125, %126 : vector<8x128xf32>
    %128 = math.tanh %127 : vector<8x128xf32>
    %129 = arith.mulf %124, %128 : vector<8x128xf32>
    %c4_i32 = arith.constant 4 : i32
    %130 = arith.index_cast %c4_i32 : i32 to index
    %c0_32 = arith.constant 0 : index
    %c0_33 = arith.constant 0 : index
    %131 = vector.load %arg0[%130, %c0_32, %c0_33] : memref<8x8x512xf32, #tpu.memory_space<vmem>>, vector<1x8x512xf32>
    %132 = vector.shape_cast %131 : vector<1x8x512xf32> to vector<8x512xf32>
    %133 = arith.truncf %129 : vector<8x128xf32> to vector<8x128xbf16>
    %c0_34 = arith.constant 0 : index
    %c0_35 = arith.constant 0 : index
    %134 = vector.load %arg1[%c0_34, %c0_35] : memref<128x512xbf16, #tpu.memory_space<vmem>>, vector<128x512xbf16>
    %cst_36 = arith.constant dense<0.000000e+00> : vector<8x512xf32>
    %135 = tpu.matmul %133, %134, %cst_36 {dimension_numbers = #tpu.dot_dimension_numbers<[1], [0], [0], [1], [0, 0, 1, 1], [], []>} : vector<8x128xbf16>, vector<128x512xbf16>, vector<8x512xf32> -> vector<8x512xf32>
    %136 = arith.addf %132, %135 : vector<8x512xf32>
    %137 = vector.extract_strided_slice %136 {offsets = [0, 0], sizes = [8, 128], strides = [1, 1]} : vector<8x512xf32> to vector<8x128xf32>
    %138 = arith.negf %137 : vector<8x128xf32>
    %139 = math.exp %138 : vector<8x128xf32>
    %cst_37 = arith.constant 1.000000e+00 : f32
    %140 = vector.broadcast %cst_37 : f32 to vector<8x128xf32>
    %141 = arith.addf %140, %139 : vector<8x128xf32>
    %142 = arith.divf %140, %141 : vector<8x128xf32>
    %143 = vector.extract_strided_slice %136 {offsets = [0, 128], sizes = [8, 128], strides = [1, 1]} : vector<8x512xf32> to vector<8x128xf32>
    %144 = arith.negf %143 : vector<8x128xf32>
    %145 = math.exp %144 : vector<8x128xf32>
    %cst_38 = arith.constant 1.000000e+00 : f32
    %146 = vector.broadcast %cst_38 : f32 to vector<8x128xf32>
    %147 = arith.addf %146, %145 : vector<8x128xf32>
    %148 = arith.divf %146, %147 : vector<8x128xf32>
    %149 = vector.extract_strided_slice %136 {offsets = [0, 256], sizes = [8, 128], strides = [1, 1]} : vector<8x512xf32> to vector<8x128xf32>
    %150 = math.tanh %149 : vector<8x128xf32>
    %151 = vector.extract_strided_slice %136 {offsets = [0, 384], sizes = [8, 128], strides = [1, 1]} : vector<8x512xf32> to vector<8x128xf32>
    %152 = arith.negf %151 : vector<8x128xf32>
    %153 = math.exp %152 : vector<8x128xf32>
    %cst_39 = arith.constant 1.000000e+00 : f32
    %154 = vector.broadcast %cst_39 : f32 to vector<8x128xf32>
    %155 = arith.addf %154, %153 : vector<8x128xf32>
    %156 = arith.divf %154, %155 : vector<8x128xf32>
    %157 = arith.mulf %148, %127 : vector<8x128xf32>
    %158 = arith.mulf %142, %150 : vector<8x128xf32>
    %159 = arith.addf %157, %158 : vector<8x128xf32>
    %160 = math.tanh %159 : vector<8x128xf32>
    %161 = arith.mulf %156, %160 : vector<8x128xf32>
    %c5_i32 = arith.constant 5 : i32
    %162 = arith.index_cast %c5_i32 : i32 to index
    %c0_40 = arith.constant 0 : index
    %c0_41 = arith.constant 0 : index
    %163 = vector.load %arg0[%162, %c0_40, %c0_41] : memref<8x8x512xf32, #tpu.memory_space<vmem>>, vector<1x8x512xf32>
    %164 = vector.shape_cast %163 : vector<1x8x512xf32> to vector<8x512xf32>
    %165 = arith.truncf %161 : vector<8x128xf32> to vector<8x128xbf16>
    %c0_42 = arith.constant 0 : index
    %c0_43 = arith.constant 0 : index
    %166 = vector.load %arg1[%c0_42, %c0_43] : memref<128x512xbf16, #tpu.memory_space<vmem>>, vector<128x512xbf16>
    %cst_44 = arith.constant dense<0.000000e+00> : vector<8x512xf32>
    %167 = tpu.matmul %165, %166, %cst_44 {dimension_numbers = #tpu.dot_dimension_numbers<[1], [0], [0], [1], [0, 0, 1, 1], [], []>} : vector<8x128xbf16>, vector<128x512xbf16>, vector<8x512xf32> -> vector<8x512xf32>
    %168 = arith.addf %164, %167 : vector<8x512xf32>
    %169 = vector.extract_strided_slice %168 {offsets = [0, 0], sizes = [8, 128], strides = [1, 1]} : vector<8x512xf32> to vector<8x128xf32>
    %170 = arith.negf %169 : vector<8x128xf32>
    %171 = math.exp %170 : vector<8x128xf32>
    %cst_45 = arith.constant 1.000000e+00 : f32
    %172 = vector.broadcast %cst_45 : f32 to vector<8x128xf32>
    %173 = arith.addf %172, %171 : vector<8x128xf32>
    %174 = arith.divf %172, %173 : vector<8x128xf32>
    %175 = vector.extract_strided_slice %168 {offsets = [0, 128], sizes = [8, 128], strides = [1, 1]} : vector<8x512xf32> to vector<8x128xf32>
    %176 = arith.negf %175 : vector<8x128xf32>
    %177 = math.exp %176 : vector<8x128xf32>
    %cst_46 = arith.constant 1.000000e+00 : f32
    %178 = vector.broadcast %cst_46 : f32 to vector<8x128xf32>
    %179 = arith.addf %178, %177 : vector<8x128xf32>
    %180 = arith.divf %178, %179 : vector<8x128xf32>
    %181 = vector.extract_strided_slice %168 {offsets = [0, 256], sizes = [8, 128], strides = [1, 1]} : vector<8x512xf32> to vector<8x128xf32>
    %182 = math.tanh %181 : vector<8x128xf32>
    %183 = vector.extract_strided_slice %168 {offsets = [0, 384], sizes = [8, 128], strides = [1, 1]} : vector<8x512xf32> to vector<8x128xf32>
    %184 = arith.negf %183 : vector<8x128xf32>
    %185 = math.exp %184 : vector<8x128xf32>
    %cst_47 = arith.constant 1.000000e+00 : f32
    %186 = vector.broadcast %cst_47 : f32 to vector<8x128xf32>
    %187 = arith.addf %186, %185 : vector<8x128xf32>
    %188 = arith.divf %186, %187 : vector<8x128xf32>
    %189 = arith.mulf %180, %159 : vector<8x128xf32>
    %190 = arith.mulf %174, %182 : vector<8x128xf32>
    %191 = arith.addf %189, %190 : vector<8x128xf32>
    %192 = math.tanh %191 : vector<8x128xf32>
    %193 = arith.mulf %188, %192 : vector<8x128xf32>
    %c6_i32 = arith.constant 6 : i32
    %194 = arith.index_cast %c6_i32 : i32 to index
    %c0_48 = arith.constant 0 : index
    %c0_49 = arith.constant 0 : index
    %195 = vector.load %arg0[%194, %c0_48, %c0_49] : memref<8x8x512xf32, #tpu.memory_space<vmem>>, vector<1x8x512xf32>
    %196 = vector.shape_cast %195 : vector<1x8x512xf32> to vector<8x512xf32>
    %197 = arith.truncf %193 : vector<8x128xf32> to vector<8x128xbf16>
    %c0_50 = arith.constant 0 : index
    %c0_51 = arith.constant 0 : index
    %198 = vector.load %arg1[%c0_50, %c0_51] : memref<128x512xbf16, #tpu.memory_space<vmem>>, vector<128x512xbf16>
    %cst_52 = arith.constant dense<0.000000e+00> : vector<8x512xf32>
    %199 = tpu.matmul %197, %198, %cst_52 {dimension_numbers = #tpu.dot_dimension_numbers<[1], [0], [0], [1], [0, 0, 1, 1], [], []>} : vector<8x128xbf16>, vector<128x512xbf16>, vector<8x512xf32> -> vector<8x512xf32>
    %200 = arith.addf %196, %199 : vector<8x512xf32>
    %201 = vector.extract_strided_slice %200 {offsets = [0, 0], sizes = [8, 128], strides = [1, 1]} : vector<8x512xf32> to vector<8x128xf32>
    %202 = arith.negf %201 : vector<8x128xf32>
    %203 = math.exp %202 : vector<8x128xf32>
    %cst_53 = arith.constant 1.000000e+00 : f32
    %204 = vector.broadcast %cst_53 : f32 to vector<8x128xf32>
    %205 = arith.addf %204, %203 : vector<8x128xf32>
    %206 = arith.divf %204, %205 : vector<8x128xf32>
    %207 = vector.extract_strided_slice %200 {offsets = [0, 128], sizes = [8, 128], strides = [1, 1]} : vector<8x512xf32> to vector<8x128xf32>
    %208 = arith.negf %207 : vector<8x128xf32>
    %209 = math.exp %208 : vector<8x128xf32>
    %cst_54 = arith.constant 1.000000e+00 : f32
    %210 = vector.broadcast %cst_54 : f32 to vector<8x128xf32>
    %211 = arith.addf %210, %209 : vector<8x128xf32>
    %212 = arith.divf %210, %211 : vector<8x128xf32>
    %213 = vector.extract_strided_slice %200 {offsets = [0, 256], sizes = [8, 128], strides = [1, 1]} : vector<8x512xf32> to vector<8x128xf32>
    %214 = math.tanh %213 : vector<8x128xf32>
    %215 = vector.extract_strided_slice %200 {offsets = [0, 384], sizes = [8, 128], strides = [1, 1]} : vector<8x512xf32> to vector<8x128xf32>
    %216 = arith.negf %215 : vector<8x128xf32>
    %217 = math.exp %216 : vector<8x128xf32>
    %cst_55 = arith.constant 1.000000e+00 : f32
    %218 = vector.broadcast %cst_55 : f32 to vector<8x128xf32>
    %219 = arith.addf %218, %217 : vector<8x128xf32>
    %220 = arith.divf %218, %219 : vector<8x128xf32>
    %221 = arith.mulf %212, %191 : vector<8x128xf32>
    %222 = arith.mulf %206, %214 : vector<8x128xf32>
    %223 = arith.addf %221, %222 : vector<8x128xf32>
    %224 = math.tanh %223 : vector<8x128xf32>
    %225 = arith.mulf %220, %224 : vector<8x128xf32>
    %c7_i32 = arith.constant 7 : i32
    %226 = arith.index_cast %c7_i32 : i32 to index
    %c0_56 = arith.constant 0 : index
    %c0_57 = arith.constant 0 : index
    %227 = vector.load %arg0[%226, %c0_56, %c0_57] : memref<8x8x512xf32, #tpu.memory_space<vmem>>, vector<1x8x512xf32>
    %228 = vector.shape_cast %227 : vector<1x8x512xf32> to vector<8x512xf32>
    %229 = arith.truncf %225 : vector<8x128xf32> to vector<8x128xbf16>
    %c0_58 = arith.constant 0 : index
    %c0_59 = arith.constant 0 : index
    %230 = vector.load %arg1[%c0_58, %c0_59] : memref<128x512xbf16, #tpu.memory_space<vmem>>, vector<128x512xbf16>
    %cst_60 = arith.constant dense<0.000000e+00> : vector<8x512xf32>
    %231 = tpu.matmul %229, %230, %cst_60 {dimension_numbers = #tpu.dot_dimension_numbers<[1], [0], [0], [1], [0, 0, 1, 1], [], []>} : vector<8x128xbf16>, vector<128x512xbf16>, vector<8x512xf32> -> vector<8x512xf32>
    %232 = arith.addf %228, %231 : vector<8x512xf32>
    %233 = vector.extract_strided_slice %232 {offsets = [0, 0], sizes = [8, 128], strides = [1, 1]} : vector<8x512xf32> to vector<8x128xf32>
    %234 = arith.negf %233 : vector<8x128xf32>
    %235 = math.exp %234 : vector<8x128xf32>
    %cst_61 = arith.constant 1.000000e+00 : f32
    %236 = vector.broadcast %cst_61 : f32 to vector<8x128xf32>
    %237 = arith.addf %236, %235 : vector<8x128xf32>
    %238 = arith.divf %236, %237 : vector<8x128xf32>
    %239 = vector.extract_strided_slice %232 {offsets = [0, 128], sizes = [8, 128], strides = [1, 1]} : vector<8x512xf32> to vector<8x128xf32>
    %240 = arith.negf %239 : vector<8x128xf32>
    %241 = math.exp %240 : vector<8x128xf32>
    %cst_62 = arith.constant 1.000000e+00 : f32
    %242 = vector.broadcast %cst_62 : f32 to vector<8x128xf32>
    %243 = arith.addf %242, %241 : vector<8x128xf32>
    %244 = arith.divf %242, %243 : vector<8x128xf32>
    %245 = vector.extract_strided_slice %232 {offsets = [0, 256], sizes = [8, 128], strides = [1, 1]} : vector<8x512xf32> to vector<8x128xf32>
    %246 = math.tanh %245 : vector<8x128xf32>
    %247 = vector.extract_strided_slice %232 {offsets = [0, 384], sizes = [8, 128], strides = [1, 1]} : vector<8x512xf32> to vector<8x128xf32>
    %248 = arith.negf %247 : vector<8x128xf32>
    %249 = math.exp %248 : vector<8x128xf32>
    %cst_63 = arith.constant 1.000000e+00 : f32
    %250 = vector.broadcast %cst_63 : f32 to vector<8x128xf32>
    %251 = arith.addf %250, %249 : vector<8x128xf32>
    %252 = arith.divf %250, %251 : vector<8x128xf32>
    %253 = arith.mulf %244, %223 : vector<8x128xf32>
    %254 = arith.mulf %238, %246 : vector<8x128xf32>
    %255 = arith.addf %253, %254 : vector<8x128xf32>
    %256 = math.tanh %255 : vector<8x128xf32>
    %257 = arith.mulf %252, %256 : vector<8x128xf32>
    %c8_i32 = arith.constant 8 : i32
    %c0_64 = arith.constant 0 : index
    %c0_65 = arith.constant 0 : index
    %258 = vector.load %arg2[%c0_64, %c0_65] : memref<128x1xf32, #tpu.memory_space<vmem>>, vector<128x1xf32>
    %cst_66 = arith.constant dense<0.000000e+00> : vector<8x1xf32>
    %259 = tpu.matmul %257, %258, %cst_66 {dimension_numbers = #tpu.dot_dimension_numbers<[1], [0], [0], [1], [0, 0, 1, 1], [], []>} : vector<8x128xf32>, vector<128x1xf32>, vector<8x1xf32> -> vector<8x1xf32>
    %c0_67 = arith.constant 0 : index
    %c0_68 = arith.constant 0 : index
    %260 = vector.load %arg3[%c0_67, %c0_68] : memref<1x1xf32, #tpu.memory_space<vmem>>, vector<1x1xf32>
    %261 = vector.broadcast %260 : vector<1x1xf32> to vector<8x1xf32>
    %262 = arith.addf %259, %261 : vector<8x1xf32>
    %c0_69 = arith.constant 0 : index
    %c0_70 = arith.constant 0 : index
    %263 = vector.load %arg4[%c0_69, %c0_70] : memref<8x1xf32, #tpu.memory_space<vmem>>, vector<8x1xf32>
    tpu.vector_store %arg4[%c0_69, %c0_70], %262 {strides = array<i32>} : memref<8x1xf32, #tpu.memory_space<vmem>>, vector<8x1xf32>,
    return
  }
}

</mosaic_0001>

<bundles_post_ra>
// kernel: tpu_custom_call.1
= control target key start
LH: loop header
LB: loop body
LE: loop exit
PB: predicated region body
PF: predicated region fallthrough
CT: control target
= control target key end

     0   :  { %s2102_s0 = inlined_call_operand.hbm [shape: f32[8,8,512], index: 0, kind: input, shape index: {}]   ;;  %s2103_s1 = inlined_call_operand.hbm [shape: bf16[128,512], index: 1, kind: input, shape index: {}]   ;;  %s2104_s2 = inlined_call_operand.vmem [shape: f32[128,1], index: 2, kind: input, shape index: {}]   ;;  %s2105_s3 = inlined_call_operand.<no memory space> [shape: f32[1,1], index: 3, kind: input, shape index: {}]   ;;  %s2106_s4 = inlined_call_operand.vmem [shape: f32[8,1], index: 4, kind: output, shape index: {}]  }
   0x1   :  { %v9_v0 = vstv %s2105_s3 }
   0x2   :  { %10 = vst [vmem:[#allocation2] sm:$0x1] %v9_v0 }
   0x3   :  { %11 = vsyncpa [#allocation4], 0  ;;  %s17_s19 = sshll.u32 %s2102_s0, 4  ;;  %s18_s19 = int_to_ptr.hbm [resolvable:$true] %s17_s19 }
   0x4   :  { %12 = vsyncpa [#allocation6], 0  ;;  %s1662_s20 = smov [#allocation3]   ;;  %s30_s24 = sshll.u32 %s2103_s1, 4  ;;  %s31_s24 = int_to_ptr.hbm [resolvable:$true] %s30_s24 }
   0x5   :  { %s19_s21 = sshll.u32 %s1662_s20, 4  ;;  %s1663_s25 = smov 512   ;;  %s20_s21 = int_to_ptr.vmem [resolvable:$true] %s19_s21 }
   0x6   :  { %s1664_s26 = smov 32   ;;  %s1665_s3 = smov [#allocation5]  }
   0x7   :  { %25 = dma.hbm_to_vmem [thread:$0]  %s18_s19, 4096, %s20_s21, [#allocation4], %s1663_s25, %s1663_s25, %s1664_s26  }
   0x8   :  { %s32_s27 = sshll.u32 %s1665_s3, 4  ;;  %s1666_s28 = smov 256   ;;  %s33_s27 = int_to_ptr.vmem [resolvable:$true] %s32_s27 }
   0x9   :  { %s1667_s29 = smov 16  }
   0xa   :  { %38 = dma.hbm_to_vmem [thread:$0]  %s31_s24, 4096, %s33_s27, [#allocation6], %s1666_s28, %s1666_s28, %s1667_s29  }
   0xb   :  { %1658 = dma.done.wait [#allocation4], 4096  }
   0xc   :  { %1659 = vsyncadd [#allocation4], 4294963200 }
   0xd   :  { %1660 = dma.done.wait [#allocation6], 4096  }
   0xe   :  { %1661 = vsyncadd [#allocation6], 4294963200  ;;  %v1404_v1 = vld [vmem:[#allocation5 + $0xe0] sm:$0xf]  ;;  %v1472_v2 = vld [vmem:[#allocation5 + $0xec] sm:$0xf0] }
   0xf   :  { %v1470_v3 = vld [vmem:[#allocation5 + $0xe4] sm:$0xf]  ;;  %v1703_v4 = vor.u32 %v1472_v2, %v1404_v1  ;;  %v1406_v5 = vld [vmem:[#allocation5 + $0xf0] sm:$0xf0]  ;;  %v1471_v6 = vld [vmem:[#allocation5 + $0xec] sm:$0xf] }
  0x10   :  { %v1414_v7 = vld [vmem:[#allocation5 + $0xf8] sm:$0xf0]  ;;  %v1705_v8 = vor.u32 %v1470_v3, %v1406_v5  ;;  %v1388_v10 = vld [vmem:[#allocation5 + $0xc0] sm:$0xf]  ;;  %v1468_v11 = vld [vmem:[#allocation5 + $0xcc] sm:$0xf0] }
  0x11   :  { %v1707_v9 = vor.u32 %v1471_v6, %v1414_v7  ;;  %v1466_v12 = vld [vmem:[#allocation5 + $0xc4] sm:$0xf]  ;;  %248 = vmatpush.bf16.msra.mxu0 %v1703_v4  ;;  %v1710_v13 = vor.u32 %v1468_v11, %v1388_v10  ;;  %v1390_v14 = vld [vmem:[#allocation5 + $0xd0] sm:$0xf0]  ;;  %v1467_v15 = vld [vmem:[#allocation5 + $0xcc] sm:$0xf] }
  0x12   :  { %v1398_v16 = vld [vmem:[#allocation5 + $0xd8] sm:$0xf0]  ;;  %261 = vmatpush.bf16.msra.mxu1 %v1705_v8  ;;  %v1714_v17 = vor.u32 %v1466_v12, %v1390_v14  ;;  %v1412_v19 = vld [vmem:[#allocation5 + $0xe8] sm:$0xf]  ;;  %v1473_v20 = vld [vmem:[#allocation5 + $0xf4] sm:$0xf0] }
  0x13   :  { %287 = vmatpush.bf16.msra.mxu3 %v1707_v9  ;;  %v1716_v18 = vor.u32 %v1467_v15, %v1398_v16  ;;  %v1372_v21 = vld [vmem:[#allocation5 + $0xa0] sm:$0xf]  ;;  %v1718_v22 = vor.u32 %v1473_v20, %v1412_v19  ;;  %v1464_v23 = vld [vmem:[#allocation5 + $0xac] sm:$0xf0]  ;;  %v1462_v24 = vld [vmem:[#allocation5 + $0xa4] sm:$0xf] }
  0x14   :  { %v1374_v25 = vld [vmem:[#allocation5 + $0xb0] sm:$0xf0]  ;;  %v1463_v26 = vld [vmem:[#allocation5 + $0xac] sm:$0xf]  ;;  %v1382_v27 = vld [vmem:[#allocation5 + $0xb8] sm:$0xf0]  ;;  %v1722_v29 = vor.u32 %v1464_v23, %v1372_v21 }
  0x15   :  { %v1396_v28 = vld [vmem:[#allocation5 + $0xc8] sm:$0xf]  ;;  %249 = vmatpush.bf16.msra.mxu0 %v1710_v13  ;;  %274 = vmatpush.bf16.msra.mxu2 %v1718_v22  ;;  %v1469_v30 = vld [vmem:[#allocation5 + $0xd4] sm:$0xf0]  ;;  %v1356_v31 = vld [vmem:[#allocation5 + $0x80] sm:$0xf]  ;;  %v1726_v33 = vor.u32 %v1462_v24, %v1374_v25  ;;  %v1728_v34 = vor.u32 %v1463_v26, %v1382_v27 }
  0x16   :  { %v1460_v32 = vld [vmem:[#allocation5 + $0x8c] sm:$0xf0]  ;;  %262 = vmatpush.bf16.msra.mxu1 %v1714_v17  ;;  %v1730_v35 = vor.u32 %v1469_v30, %v1396_v28  ;;  %v1458_v36 = vld [vmem:[#allocation5 + $0x84] sm:$0xf]  ;;  %v1358_v37 = vld [vmem:[#allocation5 + $0x90] sm:$0xf0] }
  0x17   :  { %288 = vmatpush.bf16.msra.mxu3 %v1716_v18  ;;  %v1459_v38 = vld [vmem:[#allocation5 + $0x8c] sm:$0xf]  ;;  %v1366_v39 = vld [vmem:[#allocation5 + $0x98] sm:$0xf0]  ;;  %v1380_v40 = vld [vmem:[#allocation5 + $0xa8] sm:$0xf]  ;;  %v1734_v42 = vor.u32 %v1460_v32, %v1356_v31  ;;  %v1740_v46 = vor.u32 %v1458_v36, %v1358_v37 }
  0x18   :  { %v1465_v41 = vld [vmem:[#allocation5 + $0xb4] sm:$0xf0]  ;;  %v1340_v44 = vld [vmem:[#allocation5 + $0x60] sm:$0xf]  ;;  %v1456_v45 = vld [vmem:[#allocation5 + $0x6c] sm:$0xf0]  ;;  %v1742_v47 = vor.u32 %v1459_v38, %v1366_v39 }
  0x19   :  { %250 = vmatpush.bf16.msra.mxu0 %v1722_v29  ;;  %275 = vmatpush.bf16.msra.mxu2 %v1730_v35  ;;  %v1736_v43 = vor.u32 %v1465_v41, %v1380_v40  ;;  %v1454_v48 = vld [vmem:[#allocation5 + $0x64] sm:$0xf]  ;;  %v1364_v49 = vld [vmem:[#allocation5 + $0x88] sm:$0xf]  ;;  %v1461_v50 = vld [vmem:[#allocation5 + $0x94] sm:$0xf0]  ;;  %v1746_v54 = vor.u32 %v1456_v45, %v1340_v44 }
  0x1a   :  { %263 = vmatpush.bf16.msra.mxu1 %v1726_v33  ;;  %v1342_v51 = vld [vmem:[#allocation5 + $0x70] sm:$0xf0]  ;;  %v1455_v52 = vld [vmem:[#allocation5 + $0x6c] sm:$0xf]  ;;  %v1350_v53 = vld [vmem:[#allocation5 + $0x78] sm:$0xf0]  ;;  %v1748_v55 = vor.u32 %v1461_v50, %v1364_v49 }
  0x1b   :  { %289 = vmatpush.bf16.msra.mxu3 %v1728_v34  ;;  %v1324_v56 = vld [vmem:[#allocation5 + $0x40] sm:$0xf]  ;;  %v1452_v57 = vld [vmem:[#allocation5 + $0x4c] sm:$0xf0]  ;;  %v1752_v58 = vor.u32 %v1454_v48, %v1342_v51  ;;  %v1754_v59 = vor.u32 %v1455_v52, %v1350_v53  ;;  %v1450_v60 = vld [vmem:[#allocation5 + $0x44] sm:$0xf] }
  0x1c   :  { %v1348_v61 = vld [vmem:[#allocation5 + $0x68] sm:$0xf]  ;;  %v1457_v62 = vld [vmem:[#allocation5 + $0x74] sm:$0xf0]  ;;  %v1326_v63 = vld [vmem:[#allocation5 + $0x50] sm:$0xf0]  ;;  %v1758_v2 = vor.u32 %v1452_v57, %v1324_v56 }
  0x1d   :  { %251 = vmatpush.bf16.msra.mxu0 %v1734_v42  ;;  %276 = vmatpush.bf16.msra.mxu2 %v1736_v43  ;;  %v1451_v0 = vld [vmem:[#allocation5 + $0x4c] sm:$0xf]  ;;  %v1334_v1 = vld [vmem:[#allocation5 + $0x58] sm:$0xf0]  ;;  %v1760_v3 = vor.u32 %v1457_v62, %v1348_v61  ;;  %v1308_v5 = vld [vmem:[#allocation5 + $0x20] sm:$0xf]  ;;  %v1764_v10 = vor.u32 %v1450_v60, %v1326_v63 }
  0x1e   :  { %264 = vmatpush.bf16.msra.mxu1 %v1740_v46  ;;  %v1448_v6 = vld [vmem:[#allocation5 + $0x2c] sm:$0xf0]  ;;  %v1446_v7 = vld [vmem:[#allocation5 + $0x24] sm:$0xf]  ;;  %v1766_v11 = vor.u32 %v1451_v0, %v1334_v1  ;;  %v1310_v12 = vld [vmem:[#allocation5 + $0x30] sm:$0xf0] }
  0x1f   :  { %290 = vmatpush.bf16.msra.mxu3 %v1742_v47  ;;  %v1332_v14 = vld [vmem:[#allocation5 + $0x48] sm:$0xf]  ;;  %v1453_v15 = vld [vmem:[#allocation5 + $0x54] sm:$0xf0]  ;;  %v1447_v16 = vld [vmem:[#allocation5 + $0x2c] sm:$0xf]  ;;  %v1770_v20 = vor.u32 %v1448_v6, %v1308_v5  ;;  %v1776_v25 = vor.u32 %v1446_v7, %v1310_v12 }
  0x20   :  { %v1318_v19 = vld [vmem:[#allocation5 + $0x38] sm:$0xf0]  ;;  %v1772_v21 = vor.u32 %v1453_v15, %v1332_v14  ;;  %v1292_v23 = vld [vmem:[#allocation5] sm:$0xf]  ;;  %v1444_v24 = vld [vmem:[#allocation5 + $0xc] sm:$0xf0] }
  0x21   :  { %252 = vmatpush.bf16.msra.mxu0 %v1746_v54  ;;  %277 = vmatpush.bf16.msra.mxu2 %v1748_v55  ;;  %v1778_v26 = vor.u32 %v1447_v16, %v1318_v19  ;;  %v1442_v27 = vld [vmem:[#allocation5 + $0x4] sm:$0xf]  ;;  %v1316_v28 = vld [vmem:[#allocation5 + $0x28] sm:$0xf]  ;;  %v1449_v30 = vld [vmem:[#allocation5 + $0x34] sm:$0xf0]  ;;  %v1782_v37 = vor.u32 %v1444_v24, %v1292_v23 }
  0x22   :  { %265 = vmatpush.bf16.msra.mxu1 %v1752_v58  ;;  %v1294_v31 = vld [vmem:[#allocation5 + $0x10] sm:$0xf0]  ;;  %v1443_v32 = vld [vmem:[#allocation5 + $0xc] sm:$0xf]  ;;  %v1302_v36 = vld [vmem:[#allocation5 + $0x18] sm:$0xf0]  ;;  %v1784_v38 = vor.u32 %v1449_v30, %v1316_v28 }
  0x23   :  { %291 = vmatpush.bf16.msra.mxu3 %v1754_v59  ;;  %v1788_v39 = vor.u32 %v1442_v27, %v1294_v31  ;;  %v1790_v40 = vor.u32 %v1443_v32, %v1302_v36  ;;  %v1300_v41 = vld [vmem:[#allocation5 + $0x8] sm:$0xf]  ;;  %v1445_v44 = vld [vmem:[#allocation5 + $0x14] sm:$0xf0]  ;;  %v1668_v48 = vmov 0   ;;  %v52_v49 = vld [vmem:[#allocation3] sm:$0xff] }
  0x24   :  { %v1796_v45 = vor.u32 %v1445_v44, %v1300_v41  ;;  %v53_v50 = vld [vmem:[#allocation3 + $0x8] sm:$0xff]  ;;  %v55_v61 = vld [vmem:[#allocation3 + $0x18] sm:$0xff]  ;;  %v54_v16 = vld [vmem:[#allocation3 + $0x10] sm:$0xff] }
  0x25   :  { %253 = vmatpush.bf16.msra.mxu0 %v1758_v2  ;;  %278 = vmatpush.bf16.msra.mxu2 %v1760_v3 }
  0x26   :  { %266 = vmatpush.bf16.msra.mxu1 %v1764_v10 }
  0x27   :  { %292 = vmatpush.bf16.msra.mxu3 %v1766_v11 }
  0x29   :  { %254 = vmatpush.bf16.msra.mxu0 %v1770_v20  ;;  %279 = vmatpush.bf16.msra.mxu2 %v1772_v21 }
  0x2a   :  { %267 = vmatpush.bf16.msra.mxu1 %v1776_v25 }
  0x2b   :  { %293 = vmatpush.bf16.msra.mxu3 %v1778_v26 }
  0x2d   :  { %255 = vmatpush.bf16.msra.mxu0 %v1782_v37  ;;  %280 = vmatpush.bf16.msra.mxu2 %v1784_v38 }
  0x2e   :  { %268 = vmatpush.bf16.msra.mxu1 %v1788_v39 }
  0x2f   :  { %294 = vmatpush.bf16.msra.mxu3 %v1790_v40 }
  0x30   :  { %256 = vmatmul.bf16.vlgmr.msra.gmra.mxu0 %v1668_v48 }
  0x31   :  { %373 = vmatpush.bf16.msrb.mxu0 %v1703_v4  ;;  %269 = vmatmul.bf16.vlgmr.msra.gmra.mxu1 %v1668_v48 }
  0x32   :  { %386 = vmatpush.bf16.msrb.mxu1 %v1705_v8  ;;  %295 = vmatmul.bf16.vlgmr.msra.gmra.mxu3 %v1668_v48 }
  0x33   :  { %412 = vmatpush.bf16.msrb.mxu3 %v1707_v9  ;;  %281 = vmatpush.bf16.msra.mxu2 %v1796_v45 }
  0x35   :  { %374 = vmatpush.bf16.msrb.mxu0 %v1710_v13 }
  0x36   :  { %387 = vmatpush.bf16.msrb.mxu1 %v1714_v17  ;;  %282 = vmatmul.bf16.vlgmr.msra.gmra.mxu2 %v1668_v48 }
  0x37   :  { %399 = vmatpush.bf16.msrb.mxu2 %v1718_v22  ;;  %413 = vmatpush.bf16.msrb.mxu3 %v1716_v18 }
  0x39   :  { %375 = vmatpush.bf16.msrb.mxu0 %v1722_v29 }
  0x3a   :  { %388 = vmatpush.bf16.msrb.mxu1 %v1726_v33 }
  0x3b   :  { %400 = vmatpush.bf16.msrb.mxu2 %v1730_v35  ;;  %414 = vmatpush.bf16.msrb.mxu3 %v1728_v34 }
  0x3d   :  { %376 = vmatpush.bf16.msrb.mxu0 %v1734_v42 }
  0x3e   :  { %389 = vmatpush.bf16.msrb.mxu1 %v1740_v46 }
  0x3f   :  { %401 = vmatpush.bf16.msrb.mxu2 %v1736_v43  ;;  %415 = vmatpush.bf16.msrb.mxu3 %v1742_v47 }
  0x41   :  { %377 = vmatpush.bf16.msrb.mxu0 %v1746_v54 }
  0x42   :  { %390 = vmatpush.bf16.msrb.mxu1 %v1752_v58 }
  0x43   :  { %402 = vmatpush.bf16.msrb.mxu2 %v1748_v55  ;;  %416 = vmatpush.bf16.msrb.mxu3 %v1754_v59 }
  0x45   :  { %378 = vmatpush.bf16.msrb.mxu0 %v1758_v2 }
  0x46   :  { %391 = vmatpush.bf16.msrb.mxu1 %v1764_v10 }
  0x47   :  { %403 = vmatpush.bf16.msrb.mxu2 %v1760_v3  ;;  %417 = vmatpush.bf16.msrb.mxu3 %v1766_v11 }
  0x49   :  { %379 = vmatpush.bf16.msrb.mxu0 %v1770_v20 }
  0x4a   :  { %392 = vmatpush.bf16.msrb.mxu1 %v1776_v25 }
  0x4b   :  { %404 = vmatpush.bf16.msrb.mxu2 %v1772_v21  ;;  %418 = vmatpush.bf16.msrb.mxu3 %v1778_v26 }
  0x4d   :  { %380 = vmatpush.bf16.msrb.mxu0 %v1782_v37 }
  0x4e   :  { %393 = vmatpush.bf16.msrb.mxu1 %v1788_v39 }
  0x4f   :  { %405 = vmatpush.bf16.msrb.mxu2 %v1784_v38  ;;  %419 = vmatpush.bf16.msrb.mxu3 %v1790_v40 }
  0x51   :  { %498 = vmatpush.bf16.msra.mxu0 %v1703_v4 }
  0x52   :  { %511 = vmatpush.bf16.msra.mxu1 %v1705_v8 }
  0x53   :  { %537 = vmatpush.bf16.msra.mxu3 %v1707_v9  ;;  %406 = vmatpush.bf16.msrb.mxu2 %v1796_v45 }
  0x55   :  { %499 = vmatpush.bf16.msra.mxu0 %v1710_v13 }
  0x56   :  { %512 = vmatpush.bf16.msra.mxu1 %v1714_v17 }
  0x57   :  { %524 = vmatpush.bf16.msra.mxu2 %v1718_v22  ;;  %538 = vmatpush.bf16.msra.mxu3 %v1716_v18 }
  0x59   :  { %500 = vmatpush.bf16.msra.mxu0 %v1722_v29 }
  0x5a   :  { %513 = vmatpush.bf16.msra.mxu1 %v1726_v33 }
  0x5b   :  { %525 = vmatpush.bf16.msra.mxu2 %v1730_v35  ;;  %539 = vmatpush.bf16.msra.mxu3 %v1728_v34 }
  0x5d   :  { %501 = vmatpush.bf16.msra.mxu0 %v1734_v42 }
  0x5e   :  { %514 = vmatpush.bf16.msra.mxu1 %v1740_v46 }
  0x5f   :  { %526 = vmatpush.bf16.msra.mxu2 %v1736_v43  ;;  %540 = vmatpush.bf16.msra.mxu3 %v1742_v47 }
  0x61   :  { %502 = vmatpush.bf16.msra.mxu0 %v1746_v54 }
  0x62   :  { %515 = vmatpush.bf16.msra.mxu1 %v1752_v58 }
  0x63   :  { %527 = vmatpush.bf16.msra.mxu2 %v1748_v55  ;;  %541 = vmatpush.bf16.msra.mxu3 %v1754_v59 }
  0x65   :  { %503 = vmatpush.bf16.msra.mxu0 %v1758_v2 }
  0x66   :  { %516 = vmatpush.bf16.msra.mxu1 %v1764_v10 }
  0x67   :  { %528 = vmatpush.bf16.msra.mxu2 %v1760_v3  ;;  %542 = vmatpush.bf16.msra.mxu3 %v1766_v11 }
  0x69   :  { %504 = vmatpush.bf16.msra.mxu0 %v1770_v20 }
  0x6a   :  { %517 = vmatpush.bf16.msra.mxu1 %v1776_v25 }
  0x6b   :  { %529 = vmatpush.bf16.msra.mxu2 %v1772_v21  ;;  %543 = vmatpush.bf16.msra.mxu3 %v1778_v26 }
  0x6d   :  { %505 = vmatpush.bf16.msra.mxu0 %v1782_v37 }
  0x6e   :  { %518 = vmatpush.bf16.msra.mxu1 %v1788_v39 }
  0x6f   :  { %530 = vmatpush.bf16.msra.mxu2 %v1784_v38  ;;  %544 = vmatpush.bf16.msra.mxu3 %v1790_v40 }
  0x73   :  { %531 = vmatpush.bf16.msra.mxu2 %v1796_v45 }
  0xad   :  { %v257_v51 = vpop.f32.mrf.mxu0 }
  0xae   :  { %v300_v52 = vadd.f32 %v257_v51, %v52_v49  ;;  %v270_v53 = vpop.f32.mrf.mxu1 }
  0xaf   :  { %v301_v56 = vadd.f32 %v270_v53, %v53_v50 }
  0xb0   :  { %v1418_v57 = vmul.f32 -1.442695, %v300_v52 }
  0xb1   :  { %v1419_v60 = vmul.f32 -1.442695, %v301_v56 }
  0xb2   :  { %1482 = vpow2.f32 %v1418_v57 }
  0xb3   :  { %1484 = vpow2.f32 %v1419_v60 }
  0xb5   :  { %v296_v62 = vpop.f32.mrf.mxu3  ;;  %v259_v0 = vpop.f32.mrf.mxu0 }
  0xb6   :  { %v303_v63 = vadd.f32 %v296_v62, %v55_v61  ;;  %v272_v1 = vpop.f32.mrf.mxu1 }
  0xb8   :  { %v1420_v5 = vmul.f32 -1.442695, %v303_v63  ;;  %v1483_v6 = vpop.eup %1482 }
  0xb9   :  { %v283_v7 = vpop.f32.mrf.mxu2  ;;  %v1485_v12 = vpop.eup %1484  ;;  %v307_v14 = vadd.f32 1.0, %v1483_v6 }
  0xba   :  { %1486 = vpow2.f32 %v1420_v5  ;;  %v326_v15 = vadd.f32 1.0, %v1485_v12  ;;  %v302_v24 = vadd.f32 %v283_v7, %v54_v16 }
  0xbb   :  { %1488 = vrcp.f32 %v307_v14  ;;  %v319_v48 = vand.u32 2147483648, %v307_v14  ;;  %v317_v51 = vand.u32 2147483647, %v307_v14  ;;  %vm313_vm2 = vweird.f32 %v307_v14 }
  0xbc   :  { %1490 = vrcp.f32 %v326_v15  ;;  %v338_v49 = vand.u32 2147483648, %v326_v15  ;;  %v336_v53 = vand.u32 2147483647, %v326_v15  ;;  %vm332_vm3 = vweird.f32 %v326_v15 }
  0xbd   :  { %v298_v19 = vpop.f32.mrf.mxu3  ;;  %v320_v62 = vor.u32 1.1754944e-38, %v319_v48  ;;  %vm318_vm5 = vcmp.eq.f32.partialorder %v317_v51, 8.507059e+37  ;;  %v369_v48 = vld [vmem:[#allocation3 + $0x28] sm:$0xff] }
  0xbe   :  { %v339_v0 = vor.u32 1.1754944e-38, %v338_v49  ;;  %vm337_vm7 = vcmp.eq.f32.partialorder %v336_v53, 8.507059e+37 }
  0xc0   :  { %v1487_v23 = vpop.eup %1486 }
  0xc1   :  { %v346_v27 = vadd.f32 1.0, %v1487_v23  ;;  %v285_v28 = vpop.f32.mrf.mxu2  ;;  %v1489_v30 = vpop.eup %1488 }
  0xc2   :  { %v1491_v31 = vpop.eup %1490  ;;  %v309_v32 = vmul.f32 %v1489_v30, %v307_v14  ;;  %vm314_vm0 = vweird.f32 %v1489_v30 }
  0xc3   :  { %1492 = vrcp.f32 %v346_v27  ;;  %v328_v36 = vmul.f32 %v1491_v31, %v326_v15  ;;  %vm333_vm1 = vweird.f32 %v1491_v31  ;;  %vm315_vm4 = vmor %vm313_vm2, %vm314_vm0  ;;  %v358_v15 = vand.u32 2147483648, %v346_v27 }
  0xc4   :  { %1494 = vtanh.f32 %v302_v24  ;;  %v310_v41 = vsub.f32 1.0, %v309_v32  ;;  %vm334_vm6 = vmor %vm332_vm3, %vm333_vm1  ;;  %vm352_vm9 = vweird.f32 %v346_v27  ;;  %v356_v28 = vand.u32 2147483647, %v346_v27 }
  0xc5   :  { %v329_v44 = vsub.f32 1.0, %v328_v36  ;;  %v359_v32 = vor.u32 1.1754944e-38, %v358_v15 }
  0xc6   :  { %v311_v50 = vmul.f32 %v1489_v30, %v310_v41  ;;  %vm357_vm11 = vcmp.eq.f32.partialorder %v356_v28, 8.507059e+37 }
  0xc7   :  { %v330_v52 = vmul.f32 %v1491_v31, %v329_v44 }
  0xc8   :  { %v312_v57 = vadd.f32 %v1489_v30, %v311_v50 }
  0xc9   :  { %v1493_v56 = vpop.eup %1492  ;;  %v331_v63 = vadd.f32 %v1491_v31, %v330_v52 }
  0xca   :  { %v1495_v60 = vpop.eup %1494  ;;  %v348_v61 = vmul.f32 %v1493_v56, %v346_v27  ;;  %v316_v1 = vsel %vm315_vm4, %v1489_v30, %v312_v57  ;;  %vm353_vm8 = vweird.f32 %v1493_v56  ;;  %v368_v27 = vld [vmem:[#allocation3 + $0x20] sm:$0xff]  ;;  %v371_v57 = vld [vmem:[#allocation3 + $0x38] sm:$0xff] }
  0xcb   :  { %v321_v6 = vsel %vm318_vm5, %v320_v62, %v316_v1  ;;  %v335_v7 = vsel %vm334_vm6, %v1491_v31, %v331_v63  ;;  %vm354_vm10 = vmor %vm352_vm9, %vm353_vm8 }
  0xcc   :  { %v349_v5 = vsub.f32 1.0, %v348_v61  ;;  %v340_v12 = vsel %vm337_vm7, %v339_v0, %v335_v7  ;;  %v363_v16 = vmul.f32 %v1495_v60, %v321_v6 }
  0xcd   :  { %v362_v19 = vmul.f32 0.0, %v340_v12 }
  0xce   :  { %v350_v23 = vmul.f32 %v1493_v56, %v349_v5 }
  0xcf   :  { %v1863_v24 = vadd.f32 %v363_v16, %v362_v19 }
  0xd0   :  { %v351_v14 = vadd.f32 %v1493_v56, %v350_v23  ;;  %v370_v23 = vld [vmem:[#allocation3 + $0x30] sm:$0xff] }
  0xd1   :  { %1496 = vtanh.f32 %v1863_v24 }
  0xd2   :  { %v355_v30 = vsel %vm354_vm10, %v1493_v56, %v351_v14 }
  0xd3   :  { %v360_v31 = vsel %vm357_vm11, %v359_v32, %v355_v30 }
  0xd7   :  { %v1497_v36 = vpop.eup %1496 }
  0xd8   :  { %v366_v41 = vmul.f32 %v1497_v36, %v360_v31 }
  0xda   :  { %v372_v44 = vpack.c.bf16 %v366_v41, %v366_v41 }
  0xdc   :  { %381 = vmatmul.bf16.vlgmr.msrb.gmra.mxu0 %v372_v44  ;;  %394 = vmatmul.bf16.vlgmr.msrb.gmra.mxu1 %v372_v44 }
  0xdd   :  { %407 = vmatmul.bf16.vlgmr.msrb.gmra.mxu2 %v372_v44  ;;  %420 = vmatmul.bf16.vlgmr.msrb.gmra.mxu3 %v372_v44 }
  0xde   :  { %623 = vmatpush.bf16.msrb.mxu0 %v1703_v4  ;;  %636 = vmatpush.bf16.msrb.mxu1 %v1705_v8 }
  0xdf   :  { %649 = vmatpush.bf16.msrb.mxu2 %v1718_v22  ;;  %662 = vmatpush.bf16.msrb.mxu3 %v1707_v9 }
  0xe2   :  { %624 = vmatpush.bf16.msrb.mxu0 %v1710_v13  ;;  %637 = vmatpush.bf16.msrb.mxu1 %v1714_v17 }
  0xe3   :  { %650 = vmatpush.bf16.msrb.mxu2 %v1730_v35  ;;  %663 = vmatpush.bf16.msrb.mxu3 %v1716_v18 }
  0xe6   :  { %625 = vmatpush.bf16.msrb.mxu0 %v1722_v29  ;;  %638 = vmatpush.bf16.msrb.mxu1 %v1726_v33 }
  0xe7   :  { %651 = vmatpush.bf16.msrb.mxu2 %v1736_v43  ;;  %664 = vmatpush.bf16.msrb.mxu3 %v1728_v34 }
  0xea   :  { %626 = vmatpush.bf16.msrb.mxu0 %v1734_v42  ;;  %639 = vmatpush.bf16.msrb.mxu1 %v1740_v46 }
  0xeb   :  { %652 = vmatpush.bf16.msrb.mxu2 %v1748_v55  ;;  %665 = vmatpush.bf16.msrb.mxu3 %v1742_v47 }
  0xee   :  { %627 = vmatpush.bf16.msrb.mxu0 %v1746_v54  ;;  %640 = vmatpush.bf16.msrb.mxu1 %v1752_v58 }
  0xef   :  { %653 = vmatpush.bf16.msrb.mxu2 %v1760_v3  ;;  %666 = vmatpush.bf16.msrb.mxu3 %v1754_v59 }
  0xf2   :  { %628 = vmatpush.bf16.msrb.mxu0 %v1758_v2  ;;  %641 = vmatpush.bf16.msrb.mxu1 %v1764_v10 }
  0xf3   :  { %654 = vmatpush.bf16.msrb.mxu2 %v1772_v21  ;;  %667 = vmatpush.bf16.msrb.mxu3 %v1766_v11 }
  0xf6   :  { %629 = vmatpush.bf16.msrb.mxu0 %v1770_v20  ;;  %642 = vmatpush.bf16.msrb.mxu1 %v1776_v25 }
  0xf7   :  { %655 = vmatpush.bf16.msrb.mxu2 %v1784_v38  ;;  %668 = vmatpush.bf16.msrb.mxu3 %v1778_v26 }
  0xfa   :  { %630 = vmatpush.bf16.msrb.mxu0 %v1782_v37  ;;  %643 = vmatpush.bf16.msrb.mxu1 %v1788_v39 }
  0xfb   :  { %656 = vmatpush.bf16.msrb.mxu2 %v1796_v45  ;;  %669 = vmatpush.bf16.msrb.mxu3 %v1790_v40 }
 0x159   :  { %v382_v49 = vpop.f32.mrf.mxu0  ;;  %v395_v50 = vpop.f32.mrf.mxu1 }
 0x15a   :  { %v425_v51 = vadd.f32 %v382_v49, %v368_v27  ;;  %v426_v52 = vadd.f32 %v395_v50, %v369_v48 }
 0x15c   :  { %v1421_v53 = vmul.f32 -1.442695, %v425_v51  ;;  %v1422_v56 = vmul.f32 -1.442695, %v426_v52 }
 0x15e   :  { %1498 = vpow2.f32 %v1421_v53 }
 0x15f   :  { %1500 = vpow2.f32 %v1422_v56 }
 0x160   :  { %v408_v60 = vpop.f32.mrf.mxu2  ;;  %v421_v61 = vpop.f32.mrf.mxu3 }
 0x161   :  { %v428_v62 = vadd.f32 %v421_v61, %v371_v57  ;;  %v384_v63 = vpop.f32.mrf.mxu0  ;;  %v397_v0 = vpop.f32.mrf.mxu1  ;;  %v427_v30 = vadd.f32 %v408_v60, %v370_v23 }
 0x163   :  { %v1423_v1 = vmul.f32 -1.442695, %v428_v62 }
 0x164   :  { %v1499_v5 = vpop.eup %1498 }
 0x165   :  { %v1501_v6 = vpop.eup %1500  ;;  %v432_v7 = vadd.f32 1.0, %v1499_v5  ;;  %1502 = vpow2.f32 %v1423_v1 }
 0x166   :  { %v451_v12 = vadd.f32 1.0, %v1501_v6 }
 0x167   :  { %1504 = vrcp.f32 %v432_v7  ;;  %v444_v27 = vand.u32 2147483648, %v432_v7  ;;  %v442_v50 = vand.u32 2147483647, %v432_v7  ;;  %vm438_vm14 = vweird.f32 %v432_v7 }
 0x168   :  { %1506 = vrcp.f32 %v451_v12  ;;  %v410_v16 = vpop.f32.mrf.mxu2  ;;  %v423_v19 = vpop.f32.mrf.mxu3  ;;  %v463_v48 = vand.u32 2147483648, %v451_v12  ;;  %v461_v52 = vand.u32 2147483647, %v451_v12  ;;  %vm457_vm15 = vweird.f32 %v451_v12 }
 0x169   :  { %v445_v57 = vor.u32 1.1754944e-38, %v444_v27  ;;  %vm443_vm2 = vcmp.eq.f32.partialorder %v442_v50, 8.507059e+37 }
 0x16a   :  { %v464_v62 = vor.u32 1.1754944e-38, %v463_v48  ;;  %vm462_vm3 = vcmp.eq.f32.partialorder %v461_v52, 8.507059e+37 }
 0x16b   :  { %v1503_v14 = vpop.eup %1502 }
 0x16c   :  { %v471_v15 = vadd.f32 1.0, %v1503_v14 }
 0x16d   :  { %v1505_v28 = vpop.eup %1504 }
 0x16e   :  { %v1507_v32 = vpop.eup %1506  ;;  %v434_v36 = vmul.f32 %v1505_v28, %v432_v7  ;;  %1508 = vrcp.f32 %v471_v15  ;;  %vm439_vm12 = vweird.f32 %v1505_v28  ;;  %vm477_vm5 = vweird.f32 %v471_v15 }
 0x16f   :  { %v453_v31 = vmul.f32 %v1507_v32, %v451_v12  ;;  %1510 = vtanh.f32 %v427_v30  ;;  %vm458_vm13 = vweird.f32 %v1507_v32  ;;  %vm440_vm0 = vmor %vm438_vm14, %vm439_vm12  ;;  %v483_v30 = vand.u32 2147483648, %v471_v15 }
 0x170   :  { %v435_v41 = vsub.f32 1.0, %v434_v36  ;;  %vm459_vm1 = vmor %vm457_vm15, %vm458_vm13 }
 0x171   :  { %v454_v44 = vsub.f32 1.0, %v453_v31  ;;  %v484_v31 = vor.u32 1.1754944e-38, %v483_v30 }
 0x172   :  { %v436_v49 = vmul.f32 %v1505_v28, %v435_v41 }
 0x173   :  { %v455_v51 = vmul.f32 %v1507_v32, %v454_v44 }
 0x174   :  { %v1509_v53 = vpop.eup %1508  ;;  %v437_v56 = vadd.f32 %v1505_v28, %v436_v49 }
 0x175   :  { %v456_v60 = vadd.f32 %v1507_v32, %v455_v51  ;;  %v473_v61 = vmul.f32 %v1509_v53, %v471_v15  ;;  %v1511_v0 = vpop.eup %1510  ;;  %vm478_vm4 = vweird.f32 %v1509_v53 }
 0x176   :  { %v441_v63 = vsel %vm440_vm0, %v1505_v28, %v437_v56  ;;  %v481_v28 = vand.u32 2147483647, %v471_v15  ;;  %vm479_vm6 = vmor %vm477_vm5, %vm478_vm4  ;;  %v494_v15 = vld [vmem:[#allocation3 + $0x48] sm:$0xff]  ;;  %v496_v56 = vld [vmem:[#allocation3 + $0x58] sm:$0xff] }
 0x177   :  { %v446_v1 = vsel %vm443_vm2, %v445_v57, %v441_v63  ;;  %v460_v5 = vsel %vm459_vm1, %v1507_v32, %v456_v60  ;;  %v474_v6 = vsub.f32 1.0, %v473_v61 }
 0x178   :  { %v465_v16 = vsel %vm462_vm3, %v464_v62, %v460_v5  ;;  %v488_v19 = vmul.f32 %v1511_v0, %v446_v1  ;;  %vm482_vm7 = vcmp.eq.f32.partialorder %v481_v28, 8.507059e+37 }
 0x179   :  { %v487_v23 = vmul.f32 %v465_v16, %v1863_v24  ;;  %v475_v14 = vmul.f32 %v1509_v53, %v474_v6  ;;  %v493_v24 = vld [vmem:[#allocation3 + $0x40] sm:$0xff] }
 0x17b   :  { %v1899_v7 = vadd.f32 %v488_v19, %v487_v23  ;;  %v476_v12 = vadd.f32 %v1509_v53, %v475_v14  ;;  %v495_v14 = vld [vmem:[#allocation3 + $0x50] sm:$0xff] }
 0x17d   :  { %1512 = vtanh.f32 %v1899_v7  ;;  %v480_v36 = vsel %vm479_vm6, %v1509_v53, %v476_v12 }
 0x17e   :  { %v485_v41 = vsel %vm482_vm7, %v484_v31, %v480_v36 }
 0x183   :  { %v1513_v32 = vpop.eup %1512 }
 0x184   :  { %v491_v44 = vmul.f32 %v1513_v32, %v485_v41 }
 0x186   :  { %v497_v27 = vpack.c.bf16 %v491_v44, %v491_v44 }
 0x188   :  { %506 = vmatmul.bf16.vlgmr.msra.gmra.mxu0 %v497_v27  ;;  %519 = vmatmul.bf16.vlgmr.msra.gmra.mxu1 %v497_v27 }
 0x189   :  { %532 = vmatmul.bf16.vlgmr.msra.gmra.mxu2 %v497_v27  ;;  %545 = vmatmul.bf16.vlgmr.msra.gmra.mxu3 %v497_v27 }
 0x18a   :  { %748 = vmatpush.bf16.msra.mxu0 %v1703_v4  ;;  %761 = vmatpush.bf16.msra.mxu1 %v1705_v8 }
 0x18b   :  { %774 = vmatpush.bf16.msra.mxu2 %v1718_v22  ;;  %787 = vmatpush.bf16.msra.mxu3 %v1707_v9 }
 0x18e   :  { %749 = vmatpush.bf16.msra.mxu0 %v1710_v13  ;;  %762 = vmatpush.bf16.msra.mxu1 %v1714_v17 }
 0x18f   :  { %775 = vmatpush.bf16.msra.mxu2 %v1730_v35  ;;  %788 = vmatpush.bf16.msra.mxu3 %v1716_v18 }
 0x192   :  { %750 = vmatpush.bf16.msra.mxu0 %v1722_v29  ;;  %763 = vmatpush.bf16.msra.mxu1 %v1726_v33 }
 0x193   :  { %776 = vmatpush.bf16.msra.mxu2 %v1736_v43  ;;  %789 = vmatpush.bf16.msra.mxu3 %v1728_v34 }
 0x196   :  { %751 = vmatpush.bf16.msra.mxu0 %v1734_v42  ;;  %764 = vmatpush.bf16.msra.mxu1 %v1740_v46 }
 0x197   :  { %777 = vmatpush.bf16.msra.mxu2 %v1748_v55  ;;  %790 = vmatpush.bf16.msra.mxu3 %v1742_v47 }
 0x19a   :  { %752 = vmatpush.bf16.msra.mxu0 %v1746_v54  ;;  %765 = vmatpush.bf16.msra.mxu1 %v1752_v58 }
 0x19b   :  { %778 = vmatpush.bf16.msra.mxu2 %v1760_v3  ;;  %791 = vmatpush.bf16.msra.mxu3 %v1754_v59 }
 0x19e   :  { %753 = vmatpush.bf16.msra.mxu0 %v1758_v2  ;;  %766 = vmatpush.bf16.msra.mxu1 %v1764_v10 }
 0x19f   :  { %779 = vmatpush.bf16.msra.mxu2 %v1772_v21  ;;  %792 = vmatpush.bf16.msra.mxu3 %v1766_v11 }
 0x1a2   :  { %754 = vmatpush.bf16.msra.mxu0 %v1770_v20  ;;  %767 = vmatpush.bf16.msra.mxu1 %v1776_v25 }
 0x1a3   :  { %780 = vmatpush.bf16.msra.mxu2 %v1784_v38  ;;  %793 = vmatpush.bf16.msra.mxu3 %v1778_v26 }
 0x1a6   :  { %755 = vmatpush.bf16.msra.mxu0 %v1782_v37  ;;  %768 = vmatpush.bf16.msra.mxu1 %v1788_v39 }
 0x1a7   :  { %781 = vmatpush.bf16.msra.mxu2 %v1796_v45  ;;  %794 = vmatpush.bf16.msra.mxu3 %v1790_v40 }
 0x205   :  { %v507_v48 = vpop.f32.mrf.mxu0  ;;  %v520_v49 = vpop.f32.mrf.mxu1 }
 0x206   :  { %v550_v50 = vadd.f32 %v507_v48, %v493_v24  ;;  %v551_v51 = vadd.f32 %v520_v49, %v494_v15 }
 0x208   :  { %v1424_v52 = vmul.f32 -1.442695, %v550_v50  ;;  %v1425_v53 = vmul.f32 -1.442695, %v551_v51 }
 0x20a   :  { %1514 = vpow2.f32 %v1424_v52 }
 0x20b   :  { %1516 = vpow2.f32 %v1425_v53 }
 0x20c   :  { %v533_v57 = vpop.f32.mrf.mxu2  ;;  %v546_v60 = vpop.f32.mrf.mxu3 }
 0x20d   :  { %v553_v61 = vadd.f32 %v546_v60, %v496_v56  ;;  %v509_v62 = vpop.f32.mrf.mxu0  ;;  %v522_v63 = vpop.f32.mrf.mxu1  ;;  %v552_v36 = vadd.f32 %v533_v57, %v495_v14 }
 0x20f   :  { %v1426_v0 = vmul.f32 -1.442695, %v553_v61 }
 0x210   :  { %v1515_v1 = vpop.eup %1514 }
 0x211   :  { %v1517_v5 = vpop.eup %1516  ;;  %v557_v6 = vadd.f32 1.0, %v1515_v1  ;;  %1518 = vpow2.f32 %v1426_v0 }
 0x212   :  { %v576_v16 = vadd.f32 1.0, %v1517_v5 }
 0x213   :  { %1520 = vrcp.f32 %v557_v6  ;;  %v569_v24 = vand.u32 2147483648, %v557_v6  ;;  %v567_v49 = vand.u32 2147483647, %v557_v6  ;;  %vm563_vm10 = vweird.f32 %v557_v6 }
 0x214   :  { %1522 = vrcp.f32 %v576_v16  ;;  %v535_v19 = vpop.f32.mrf.mxu2  ;;  %v548_v23 = vpop.f32.mrf.mxu3  ;;  %v588_v15 = vand.u32 2147483648, %v576_v16  ;;  %v586_v51 = vand.u32 2147483647, %v576_v16  ;;  %vm582_vm11 = vweird.f32 %v576_v16 }
 0x215   :  { %v570_v56 = vor.u32 1.1754944e-38, %v569_v24  ;;  %vm568_vm14 = vcmp.eq.f32.partialorder %v567_v49, 8.507059e+37 }
 0x216   :  { %v589_v61 = vor.u32 1.1754944e-38, %v588_v15  ;;  %vm587_vm15 = vcmp.eq.f32.partialorder %v586_v51, 8.507059e+37 }
 0x217   :  { %v1519_v12 = vpop.eup %1518 }
 0x218   :  { %v596_v30 = vadd.f32 1.0, %v1519_v12 }
 0x219   :  { %v1521_v28 = vpop.eup %1520 }
 0x21a   :  { %v1523_v31 = vpop.eup %1522  ;;  %v559_v32 = vmul.f32 %v1521_v28, %v557_v6  ;;  %1524 = vrcp.f32 %v596_v30  ;;  %vm564_vm8 = vweird.f32 %v1521_v28  ;;  %vm602_vm1 = vweird.f32 %v596_v30 }
 0x21b   :  { %v578_v41 = vmul.f32 %v1523_v31, %v576_v16  ;;  %1526 = vtanh.f32 %v552_v36  ;;  %vm583_vm9 = vweird.f32 %v1523_v31  ;;  %vm565_vm12 = vmor %vm563_vm10, %vm564_vm8  ;;  %v608_v36 = vand.u32 2147483648, %v596_v30 }
 0x21c   :  { %v560_v44 = vsub.f32 1.0, %v559_v32  ;;  %vm584_vm13 = vmor %vm582_vm11, %vm583_vm9 }
 0x21d   :  { %v579_v27 = vsub.f32 1.0, %v578_v41  ;;  %v609_v41 = vor.u32 1.1754944e-38, %v608_v36 }
 0x21e   :  { %v561_v48 = vmul.f32 %v1521_v28, %v560_v44 }
 0x21f   :  { %v580_v50 = vmul.f32 %v1523_v31, %v579_v27 }
 0x220   :  { %v1525_v52 = vpop.eup %1524  ;;  %v562_v53 = vadd.f32 %v1521_v28, %v561_v48 }
 0x221   :  { %v581_v57 = vadd.f32 %v1523_v31, %v580_v50  ;;  %v598_v60 = vmul.f32 %v1525_v52, %v596_v30  ;;  %v1527_v63 = vpop.eup %1526  ;;  %vm603_vm0 = vweird.f32 %v1525_v52 }
 0x222   :  { %v566_v62 = vsel %vm565_vm12, %v1521_v28, %v562_v53  ;;  %v606_v28 = vand.u32 2147483647, %v596_v30  ;;  %vm604_vm2 = vmor %vm602_vm1, %vm603_vm0  ;;  %v619_v30 = vld [vmem:[#allocation3 + $0x68] sm:$0xff]  ;;  %v621_v53 = vld [vmem:[#allocation3 + $0x78] sm:$0xff] }
 0x223   :  { %v571_v0 = vsel %vm568_vm14, %v570_v56, %v566_v62  ;;  %v585_v1 = vsel %vm584_vm13, %v1523_v31, %v581_v57  ;;  %v599_v5 = vsub.f32 1.0, %v598_v60 }
 0x224   :  { %v590_v19 = vsel %vm587_vm15, %v589_v61, %v585_v1  ;;  %v613_v23 = vmul.f32 %v1527_v63, %v571_v0  ;;  %vm607_vm3 = vcmp.eq.f32.partialorder %v606_v28, 8.507059e+37 }
 0x225   :  { %v612_v14 = vmul.f32 %v590_v19, %v1899_v7  ;;  %v600_v12 = vmul.f32 %v1525_v52, %v599_v5  ;;  %v618_v7 = vld [vmem:[#allocation3 + $0x60] sm:$0xff] }
 0x227   :  { %v1935_v6 = vadd.f32 %v613_v23, %v612_v14  ;;  %v601_v16 = vadd.f32 %v1525_v52, %v600_v12  ;;  %v620_v12 = vld [vmem:[#allocation3 + $0x70] sm:$0xff] }
 0x229   :  { %1528 = vtanh.f32 %v1935_v6  ;;  %v605_v32 = vsel %vm604_vm2, %v1525_v52, %v601_v16 }
 0x22a   :  { %v610_v44 = vsel %vm607_vm3, %v609_v41, %v605_v32 }
 0x22f   :  { %v1529_v31 = vpop.eup %1528 }
 0x230   :  { %v616_v27 = vmul.f32 %v1529_v31, %v610_v44 }
 0x232   :  { %v622_v24 = vpack.c.bf16 %v616_v27, %v616_v27 }
 0x234   :  { %631 = vmatmul.bf16.vlgmr.msrb.gmra.mxu0 %v622_v24  ;;  %644 = vmatmul.bf16.vlgmr.msrb.gmra.mxu1 %v622_v24 }
 0x235   :  { %657 = vmatmul.bf16.vlgmr.msrb.gmra.mxu2 %v622_v24  ;;  %670 = vmatmul.bf16.vlgmr.msrb.gmra.mxu3 %v622_v24 }
 0x236   :  { %873 = vmatpush.bf16.msrb.mxu0 %v1703_v4  ;;  %886 = vmatpush.bf16.msrb.mxu1 %v1705_v8 }
 0x237   :  { %899 = vmatpush.bf16.msrb.mxu2 %v1718_v22  ;;  %912 = vmatpush.bf16.msrb.mxu3 %v1707_v9 }
 0x23a   :  { %874 = vmatpush.bf16.msrb.mxu0 %v1710_v13  ;;  %887 = vmatpush.bf16.msrb.mxu1 %v1714_v17 }
 0x23b   :  { %900 = vmatpush.bf16.msrb.mxu2 %v1730_v35  ;;  %913 = vmatpush.bf16.msrb.mxu3 %v1716_v18 }
 0x23e   :  { %875 = vmatpush.bf16.msrb.mxu0 %v1722_v29  ;;  %888 = vmatpush.bf16.msrb.mxu1 %v1726_v33 }
 0x23f   :  { %901 = vmatpush.bf16.msrb.mxu2 %v1736_v43  ;;  %914 = vmatpush.bf16.msrb.mxu3 %v1728_v34 }
 0x242   :  { %876 = vmatpush.bf16.msrb.mxu0 %v1734_v42  ;;  %889 = vmatpush.bf16.msrb.mxu1 %v1740_v46 }
 0x243   :  { %902 = vmatpush.bf16.msrb.mxu2 %v1748_v55  ;;  %915 = vmatpush.bf16.msrb.mxu3 %v1742_v47 }
 0x246   :  { %877 = vmatpush.bf16.msrb.mxu0 %v1746_v54  ;;  %890 = vmatpush.bf16.msrb.mxu1 %v1752_v58 }
 0x247   :  { %903 = vmatpush.bf16.msrb.mxu2 %v1760_v3  ;;  %916 = vmatpush.bf16.msrb.mxu3 %v1754_v59 }
 0x24a   :  { %878 = vmatpush.bf16.msrb.mxu0 %v1758_v2  ;;  %891 = vmatpush.bf16.msrb.mxu1 %v1764_v10 }
 0x24b   :  { %904 = vmatpush.bf16.msrb.mxu2 %v1772_v21  ;;  %917 = vmatpush.bf16.msrb.mxu3 %v1766_v11 }
 0x24e   :  { %879 = vmatpush.bf16.msrb.mxu0 %v1770_v20  ;;  %892 = vmatpush.bf16.msrb.mxu1 %v1776_v25 }
 0x24f   :  { %905 = vmatpush.bf16.msrb.mxu2 %v1784_v38  ;;  %918 = vmatpush.bf16.msrb.mxu3 %v1778_v26 }
 0x252   :  { %880 = vmatpush.bf16.msrb.mxu0 %v1782_v37  ;;  %893 = vmatpush.bf16.msrb.mxu1 %v1788_v39 }
 0x253   :  { %906 = vmatpush.bf16.msrb.mxu2 %v1796_v45  ;;  %919 = vmatpush.bf16.msrb.mxu3 %v1790_v40 }
 0x2b1   :  { %v632_v15 = vpop.f32.mrf.mxu0  ;;  %v645_v48 = vpop.f32.mrf.mxu1 }
 0x2b2   :  { %v675_v49 = vadd.f32 %v632_v15, %v618_v7  ;;  %v676_v50 = vadd.f32 %v645_v48, %v619_v30 }
 0x2b4   :  { %v1427_v51 = vmul.f32 -1.442695, %v675_v49  ;;  %v1428_v52 = vmul.f32 -1.442695, %v676_v50 }
 0x2b6   :  { %1530 = vpow2.f32 %v1427_v51 }
 0x2b7   :  { %1532 = vpow2.f32 %v1428_v52 }
 0x2b8   :  { %v658_v56 = vpop.f32.mrf.mxu2  ;;  %v671_v57 = vpop.f32.mrf.mxu3 }
 0x2b9   :  { %v678_v60 = vadd.f32 %v671_v57, %v621_v53  ;;  %v634_v61 = vpop.f32.mrf.mxu0  ;;  %v647_v62 = vpop.f32.mrf.mxu1  ;;  %v677_v32 = vadd.f32 %v658_v56, %v620_v12 }
 0x2bb   :  { %v1429_v63 = vmul.f32 -1.442695, %v678_v60 }
 0x2bc   :  { %v1531_v0 = vpop.eup %1530 }
 0x2bd   :  { %v1533_v1 = vpop.eup %1532  ;;  %v682_v5 = vadd.f32 1.0, %v1531_v0  ;;  %1534 = vpow2.f32 %v1429_v63 }
 0x2be   :  { %v701_v19 = vadd.f32 1.0, %v1533_v1 }
 0x2bf   :  { %1536 = vrcp.f32 %v682_v5  ;;  %v694_v7 = vand.u32 2147483648, %v682_v5  ;;  %v692_v48 = vand.u32 2147483647, %v682_v5  ;;  %vm688_vm6 = vweird.f32 %v682_v5 }
 0x2c0   :  { %1538 = vrcp.f32 %v701_v19  ;;  %v660_v23 = vpop.f32.mrf.mxu2  ;;  %v673_v14 = vpop.f32.mrf.mxu3  ;;  %v713_v30 = vand.u32 2147483648, %v701_v19  ;;  %v711_v50 = vand.u32 2147483647, %v701_v19  ;;  %vm707_vm7 = vweird.f32 %v701_v19 }
 0x2c1   :  { %v695_v53 = vor.u32 1.1754944e-38, %v694_v7  ;;  %vm693_vm10 = vcmp.eq.f32.partialorder %v692_v48, 8.507059e+37 }
 0x2c2   :  { %v714_v60 = vor.u32 1.1754944e-38, %v713_v30  ;;  %vm712_vm11 = vcmp.eq.f32.partialorder %v711_v50, 8.507059e+37 }
 0x2c3   :  { %v1535_v16 = vpop.eup %1534 }
 0x2c4   :  { %v721_v36 = vadd.f32 1.0, %v1535_v16 }
 0x2c5   :  { %v1537_v28 = vpop.eup %1536 }
 0x2c6   :  { %v1539_v41 = vpop.eup %1538  ;;  %v684_v31 = vmul.f32 %v1537_v28, %v682_v5  ;;  %1540 = vrcp.f32 %v721_v36  ;;  %vm689_vm4 = vweird.f32 %v1537_v28  ;;  %vm727_vm13 = vweird.f32 %v721_v36 }
 0x2c7   :  { %v703_v44 = vmul.f32 %v1539_v41, %v701_v19  ;;  %1542 = vtanh.f32 %v677_v32  ;;  %vm708_vm5 = vweird.f32 %v1539_v41  ;;  %vm690_vm8 = vmor %vm688_vm6, %vm689_vm4  ;;  %v733_v32 = vand.u32 2147483648, %v721_v36 }
 0x2c8   :  { %v685_v27 = vsub.f32 1.0, %v684_v31  ;;  %vm709_vm9 = vmor %vm707_vm7, %vm708_vm5 }
 0x2c9   :  { %v704_v24 = vsub.f32 1.0, %v703_v44  ;;  %v734_v44 = vor.u32 1.1754944e-38, %v733_v32 }
 0x2ca   :  { %v686_v15 = vmul.f32 %v1537_v28, %v685_v27 }
 0x2cb   :  { %v705_v49 = vmul.f32 %v1539_v41, %v704_v24 }
 0x2cc   :  { %v1541_v51 = vpop.eup %1540  ;;  %v687_v52 = vadd.f32 %v1537_v28, %v686_v15 }
 0x2cd   :  { %v706_v56 = vadd.f32 %v1539_v41, %v705_v49  ;;  %v723_v57 = vmul.f32 %v1541_v51, %v721_v36  ;;  %v1543_v62 = vpop.eup %1542  ;;  %vm728_vm12 = vweird.f32 %v1541_v51 }
 0x2ce   :  { %v691_v61 = vsel %vm690_vm8, %v1537_v28, %v687_v52  ;;  %v731_v28 = vand.u32 2147483647, %v721_v36  ;;  %vm729_vm14 = vmor %vm727_vm13, %vm728_vm12  ;;  %v744_v36 = vld [vmem:[#allocation3 + $0x88] sm:$0xff]  ;;  %v746_v52 = vld [vmem:[#allocation3 + $0x98] sm:$0xff] }
 0x2cf   :  { %v696_v63 = vsel %vm693_vm10, %v695_v53, %v691_v61  ;;  %v710_v0 = vsel %vm709_vm9, %v1539_v41, %v706_v56  ;;  %v724_v1 = vsub.f32 1.0, %v723_v57 }
 0x2d0   :  { %v715_v23 = vsel %vm712_vm11, %v714_v60, %v710_v0  ;;  %v738_v14 = vmul.f32 %v1543_v62, %v696_v63  ;;  %vm732_vm15 = vcmp.eq.f32.partialorder %v731_v28, 8.507059e+37 }
 0x2d1   :  { %v737_v12 = vmul.f32 %v715_v23, %v1935_v6  ;;  %v725_v16 = vmul.f32 %v1541_v51, %v724_v1  ;;  %v743_v6 = vld [vmem:[#allocation3 + $0x80] sm:$0xff] }
 0x2d3   :  { %v1971_v5 = vadd.f32 %v738_v14, %v737_v12  ;;  %v726_v19 = vadd.f32 %v1541_v51, %v725_v16  ;;  %v745_v16 = vld [vmem:[#allocation3 + $0x90] sm:$0xff] }
 0x2d5   :  { %1544 = vtanh.f32 %v1971_v5  ;;  %v730_v31 = vsel %vm729_vm14, %v1541_v51, %v726_v19 }
 0x2d6   :  { %v735_v27 = vsel %vm732_vm15, %v734_v44, %v730_v31 }
 0x2db   :  { %v1545_v41 = vpop.eup %1544 }
 0x2dc   :  { %v741_v24 = vmul.f32 %v1545_v41, %v735_v27 }
 0x2de   :  { %v747_v7 = vpack.c.bf16 %v741_v24, %v741_v24 }
 0x2e0   :  { %756 = vmatmul.bf16.vlgmr.msra.gmra.mxu0 %v747_v7  ;;  %769 = vmatmul.bf16.vlgmr.msra.gmra.mxu1 %v747_v7 }
 0x2e1   :  { %782 = vmatmul.bf16.vlgmr.msra.gmra.mxu2 %v747_v7  ;;  %795 = vmatmul.bf16.vlgmr.msra.gmra.mxu3 %v747_v7 }
 0x2e2   :  { %998 = vmatpush.bf16.msra.mxu0 %v1703_v4  ;;  %1011 = vmatpush.bf16.msra.mxu1 %v1705_v8 }
 0x2e3   :  { %1024 = vmatpush.bf16.msra.mxu2 %v1718_v22  ;;  %1037 = vmatpush.bf16.msra.mxu3 %v1707_v9 }
 0x2e6   :  { %999 = vmatpush.bf16.msra.mxu0 %v1710_v13  ;;  %1012 = vmatpush.bf16.msra.mxu1 %v1714_v17 }
 0x2e7   :  { %1025 = vmatpush.bf16.msra.mxu2 %v1730_v35  ;;  %1038 = vmatpush.bf16.msra.mxu3 %v1716_v18 }
 0x2ea   :  { %1000 = vmatpush.bf16.msra.mxu0 %v1722_v29  ;;  %1013 = vmatpush.bf16.msra.mxu1 %v1726_v33 }
 0x2eb   :  { %1026 = vmatpush.bf16.msra.mxu2 %v1736_v43  ;;  %1039 = vmatpush.bf16.msra.mxu3 %v1728_v34 }
 0x2ee   :  { %1001 = vmatpush.bf16.msra.mxu0 %v1734_v42  ;;  %1014 = vmatpush.bf16.msra.mxu1 %v1740_v46 }
 0x2ef   :  { %1027 = vmatpush.bf16.msra.mxu2 %v1748_v55  ;;  %1040 = vmatpush.bf16.msra.mxu3 %v1742_v47 }
 0x2f2   :  { %1002 = vmatpush.bf16.msra.mxu0 %v1746_v54  ;;  %1015 = vmatpush.bf16.msra.mxu1 %v1752_v58 }
 0x2f3   :  { %1028 = vmatpush.bf16.msra.mxu2 %v1760_v3  ;;  %1041 = vmatpush.bf16.msra.mxu3 %v1754_v59 }
 0x2f6   :  { %1003 = vmatpush.bf16.msra.mxu0 %v1758_v2  ;;  %1016 = vmatpush.bf16.msra.mxu1 %v1764_v10 }
 0x2f7   :  { %1029 = vmatpush.bf16.msra.mxu2 %v1772_v21  ;;  %1042 = vmatpush.bf16.msra.mxu3 %v1766_v11 }
 0x2fa   :  { %1004 = vmatpush.bf16.msra.mxu0 %v1770_v20  ;;  %1017 = vmatpush.bf16.msra.mxu1 %v1776_v25 }
 0x2fb   :  { %1030 = vmatpush.bf16.msra.mxu2 %v1784_v38  ;;  %1043 = vmatpush.bf16.msra.mxu3 %v1778_v26 }
 0x2fe   :  { %1005 = vmatpush.bf16.msra.mxu0 %v1782_v37  ;;  %1018 = vmatpush.bf16.msra.mxu1 %v1788_v39 }
 0x2ff   :  { %1031 = vmatpush.bf16.msra.mxu2 %v1796_v45  ;;  %1044 = vmatpush.bf16.msra.mxu3 %v1790_v40 }
 0x35d   :  { %v757_v30 = vpop.f32.mrf.mxu0  ;;  %v770_v15 = vpop.f32.mrf.mxu1 }
 0x35e   :  { %v800_v48 = vadd.f32 %v757_v30, %v743_v6  ;;  %v801_v49 = vadd.f32 %v770_v15, %v744_v36 }
 0x360   :  { %v1430_v50 = vmul.f32 -1.442695, %v800_v48  ;;  %v1431_v51 = vmul.f32 -1.442695, %v801_v49 }
 0x362   :  { %1546 = vpow2.f32 %v1430_v50 }
 0x363   :  { %1548 = vpow2.f32 %v1431_v51 }
 0x364   :  { %v783_v53 = vpop.f32.mrf.mxu2  ;;  %v796_v56 = vpop.f32.mrf.mxu3 }
 0x365   :  { %v803_v57 = vadd.f32 %v796_v56, %v746_v52  ;;  %v759_v60 = vpop.f32.mrf.mxu0  ;;  %v772_v61 = vpop.f32.mrf.mxu1  ;;  %v802_v31 = vadd.f32 %v783_v53, %v745_v16 }
 0x367   :  { %v1432_v62 = vmul.f32 -1.442695, %v803_v57 }
 0x368   :  { %v1547_v63 = vpop.eup %1546 }
 0x369   :  { %v1549_v0 = vpop.eup %1548  ;;  %v807_v1 = vadd.f32 1.0, %v1547_v63  ;;  %1550 = vpow2.f32 %v1432_v62 }
 0x36a   :  { %v826_v23 = vadd.f32 1.0, %v1549_v0 }
 0x36b   :  { %1552 = vrcp.f32 %v807_v1  ;;  %v819_v6 = vand.u32 2147483648, %v807_v1  ;;  %v817_v15 = vand.u32 2147483647, %v807_v1  ;;  %vm813_vm2 = vweird.f32 %v807_v1 }
 0x36c   :  { %1554 = vrcp.f32 %v826_v23  ;;  %v785_v14 = vpop.f32.mrf.mxu2  ;;  %v798_v12 = vpop.f32.mrf.mxu3  ;;  %v838_v36 = vand.u32 2147483648, %v826_v23  ;;  %v836_v49 = vand.u32 2147483647, %v826_v23  ;;  %vm832_vm3 = vweird.f32 %v826_v23 }
 0x36d   :  { %v820_v52 = vor.u32 1.1754944e-38, %v819_v6  ;;  %vm818_vm6 = vcmp.eq.f32.partialorder %v817_v15, 8.507059e+37 }
 0x36e   :  { %v839_v57 = vor.u32 1.1754944e-38, %v838_v36  ;;  %vm837_vm7 = vcmp.eq.f32.partialorder %v836_v49, 8.507059e+37 }
 0x36f   :  { %v1551_v19 = vpop.eup %1550 }
 0x370   :  { %v846_v32 = vadd.f32 1.0, %v1551_v19 }
 0x371   :  { %v1553_v28 = vpop.eup %1552 }
 0x372   :  { %v1555_v44 = vpop.eup %1554  ;;  %v809_v41 = vmul.f32 %v1553_v28, %v807_v1  ;;  %1556 = vrcp.f32 %v846_v32  ;;  %vm814_vm0 = vweird.f32 %v1553_v28  ;;  %vm852_vm9 = vweird.f32 %v846_v32 }
 0x373   :  { %v828_v27 = vmul.f32 %v1555_v44, %v826_v23  ;;  %1558 = vtanh.f32 %v802_v31  ;;  %vm833_vm1 = vweird.f32 %v1555_v44  ;;  %vm815_vm4 = vmor %vm813_vm2, %vm814_vm0  ;;  %v858_v31 = vand.u32 2147483648, %v846_v32 }
 0x374   :  { %v810_v24 = vsub.f32 1.0, %v809_v41  ;;  %vm834_vm5 = vmor %vm832_vm3, %vm833_vm1 }
 0x375   :  { %v829_v7 = vsub.f32 1.0, %v828_v27  ;;  %v859_v27 = vor.u32 1.1754944e-38, %v858_v31 }
 0x376   :  { %v811_v30 = vmul.f32 %v1553_v28, %v810_v24 }
 0x377   :  { %v830_v48 = vmul.f32 %v1555_v44, %v829_v7 }
 0x378   :  { %v1557_v50 = vpop.eup %1556  ;;  %v812_v51 = vadd.f32 %v1553_v28, %v811_v30 }
 0x379   :  { %v831_v53 = vadd.f32 %v1555_v44, %v830_v48  ;;  %v848_v56 = vmul.f32 %v1557_v50, %v846_v32  ;;  %v1559_v61 = vpop.eup %1558  ;;  %vm853_vm8 = vweird.f32 %v1557_v50 }
 0x37a   :  { %v816_v60 = vsel %vm815_vm4, %v1553_v28, %v812_v51  ;;  %v856_v28 = vand.u32 2147483647, %v846_v32  ;;  %vm854_vm10 = vmor %vm852_vm9, %vm853_vm8 }
 0x37b   :  { %v821_v62 = vsel %vm818_vm6, %v820_v52, %v816_v60  ;;  %v835_v63 = vsel %vm834_vm5, %v1555_v44, %v831_v53  ;;  %v849_v0 = vsub.f32 1.0, %v848_v56 }
 0x37c   :  { %v840_v14 = vsel %vm837_vm7, %v839_v57, %v835_v63  ;;  %v863_v12 = vmul.f32 %v1559_v61, %v821_v62  ;;  %vm857_vm11 = vcmp.eq.f32.partialorder %v856_v28, 8.507059e+37 }
 0x37d   :  { %v862_v16 = vmul.f32 %v840_v14, %v1971_v5  ;;  %v850_v19 = vmul.f32 %v1557_v50, %v849_v0 }
 0x37f   :  { %v2007_v1 = vadd.f32 %v863_v12, %v862_v16  ;;  %v851_v23 = vadd.f32 %v1557_v50, %v850_v19 }
 0x381   :  { %1560 = vtanh.f32 %v2007_v1  ;;  %v855_v41 = vsel %vm854_vm10, %v1557_v50, %v851_v23 }
 0x382   :  { %v860_v24 = vsel %vm857_vm11, %v859_v27, %v855_v41 }
 0x387   :  { %v1561_v44 = vpop.eup %1560 }
 0x388   :  { %v866_v7 = vmul.f32 %v1561_v44, %v860_v24 }
 0x38a   :  { %v872_v6 = vpack.c.bf16 %v866_v7, %v866_v7 }
 0x38c   :  { %881 = vmatmul.bf16.vlgmr.msrb.gmra.mxu0 %v872_v6  ;;  %894 = vmatmul.bf16.vlgmr.msrb.gmra.mxu1 %v872_v6 }
 0x38d   :  { %907 = vmatmul.bf16.vlgmr.msrb.gmra.mxu2 %v872_v6  ;;  %920 = vmatmul.bf16.vlgmr.msrb.gmra.mxu3 %v872_v6  ;;  %v994_v6 = vld [vmem:[#allocation3 + $0xc8] sm:$0xff] }
 0x38e   :  { %1123 = vmatpush.bf16.msrb.mxu0 %v1703_v4  ;;  %1136 = vmatpush.bf16.msrb.mxu1 %v1705_v8  ;;  %v868_v4 = vld [vmem:[#allocation3 + $0xa0] sm:$0xff]  ;;  %v869_v8 = vld [vmem:[#allocation3 + $0xa8] sm:$0xff] }
 0x38f   :  { %1149 = vmatpush.bf16.msrb.mxu2 %v1718_v22  ;;  %1162 = vmatpush.bf16.msrb.mxu3 %v1707_v9 }
 0x392   :  { %1124 = vmatpush.bf16.msrb.mxu0 %v1710_v13  ;;  %1137 = vmatpush.bf16.msrb.mxu1 %v1714_v17 }
 0x393   :  { %1150 = vmatpush.bf16.msrb.mxu2 %v1730_v35  ;;  %1163 = vmatpush.bf16.msrb.mxu3 %v1716_v18 }
 0x396   :  { %1125 = vmatpush.bf16.msrb.mxu0 %v1722_v29  ;;  %1138 = vmatpush.bf16.msrb.mxu1 %v1726_v33  ;;  %v871_v33 = vld [vmem:[#allocation3 + $0xb8] sm:$0xff] }
 0x397   :  { %1151 = vmatpush.bf16.msrb.mxu2 %v1736_v43  ;;  %1164 = vmatpush.bf16.msrb.mxu3 %v1728_v34 }
 0x39a   :  { %1126 = vmatpush.bf16.msrb.mxu0 %v1734_v42  ;;  %1139 = vmatpush.bf16.msrb.mxu1 %v1740_v46 }
 0x39b   :  { %1152 = vmatpush.bf16.msrb.mxu2 %v1748_v55  ;;  %1165 = vmatpush.bf16.msrb.mxu3 %v1742_v47 }
 0x39e   :  { %1127 = vmatpush.bf16.msrb.mxu0 %v1746_v54  ;;  %1140 = vmatpush.bf16.msrb.mxu1 %v1752_v58 }
 0x39f   :  { %1153 = vmatpush.bf16.msrb.mxu2 %v1760_v3  ;;  %1166 = vmatpush.bf16.msrb.mxu3 %v1754_v59 }
 0x3a2   :  { %1128 = vmatpush.bf16.msrb.mxu0 %v1758_v2  ;;  %1141 = vmatpush.bf16.msrb.mxu1 %v1764_v10  ;;  %v870_v10 = vld [vmem:[#allocation3 + $0xb0] sm:$0xff] }
 0x3a3   :  { %1154 = vmatpush.bf16.msrb.mxu2 %v1772_v21  ;;  %1167 = vmatpush.bf16.msrb.mxu3 %v1766_v11 }
 0x3a6   :  { %1129 = vmatpush.bf16.msrb.mxu0 %v1770_v20  ;;  %1142 = vmatpush.bf16.msrb.mxu1 %v1776_v25 }
 0x3a7   :  { %1155 = vmatpush.bf16.msrb.mxu2 %v1784_v38  ;;  %1168 = vmatpush.bf16.msrb.mxu3 %v1778_v26 }
 0x3aa   :  { %1130 = vmatpush.bf16.msrb.mxu0 %v1782_v37  ;;  %1143 = vmatpush.bf16.msrb.mxu1 %v1788_v39 }
 0x3ab   :  { %1156 = vmatpush.bf16.msrb.mxu2 %v1796_v45  ;;  %1169 = vmatpush.bf16.msrb.mxu3 %v1790_v40 }
 0x409   :  { %v882_v9 = vpop.f32.mrf.mxu0  ;;  %v895_v13 = vpop.f32.mrf.mxu1 }
 0x40a   :  { %v925_v17 = vadd.f32 %v882_v9, %v868_v4  ;;  %v926_v18 = vadd.f32 %v895_v13, %v869_v8 }
 0x40c   :  { %v1433_v22 = vmul.f32 -1.442695, %v925_v17  ;;  %v1434_v29 = vmul.f32 -1.442695, %v926_v18 }
 0x40e   :  { %1562 = vpow2.f32 %v1433_v22  ;;  %v996_v22 = vld [vmem:[#allocation3 + $0xd8] sm:$0xff] }
 0x40f   :  { %1564 = vpow2.f32 %v1434_v29 }
 0x410   :  { %v908_v34 = vpop.f32.mrf.mxu2  ;;  %v921_v35 = vpop.f32.mrf.mxu3 }
 0x411   :  { %v928_v42 = vadd.f32 %v921_v35, %v871_v33  ;;  %v884_v43 = vpop.f32.mrf.mxu0  ;;  %v897_v46 = vpop.f32.mrf.mxu1  ;;  %v927_v25 = vadd.f32 %v908_v34, %v870_v10 }
 0x413   :  { %v1435_v47 = vmul.f32 -1.442695, %v928_v42 }
 0x414   :  { %v1563_v54 = vpop.eup %1562 }
 0x415   :  { %v1565_v55 = vpop.eup %1564  ;;  %v932_v58 = vadd.f32 1.0, %v1563_v54  ;;  %1566 = vpow2.f32 %v1435_v47 }
 0x416   :  { %v951_v59 = vadd.f32 1.0, %v1565_v55 }
 0x417   :  { %1568 = vrcp.f32 %v932_v58  ;;  %v944_v45 = vand.u32 2147483648, %v932_v58  ;;  %v942_v36 = vand.u32 2147483647, %v932_v58  ;;  %vm938_vm14 = vweird.f32 %v932_v58 }
 0x418   :  { %1570 = vrcp.f32 %v951_v59  ;;  %v910_v2 = vpop.f32.mrf.mxu2  ;;  %v923_v3 = vpop.f32.mrf.mxu3  ;;  %v963_v5 = vand.u32 2147483648, %v951_v59  ;;  %v961_v15 = vand.u32 2147483647, %v951_v59  ;;  %vm957_vm15 = vweird.f32 %v951_v59 }
 0x419   :  { %v945_v50 = vor.u32 1.1754944e-38, %v944_v45  ;;  %vm943_vm2 = vcmp.eq.f32.partialorder %v942_v36, 8.507059e+37  ;;  %v995_v2 = vld [vmem:[#allocation3 + $0xd0] sm:$0xff] }
 0x41a   :  { %v964_v53 = vor.u32 1.1754944e-38, %v963_v5  ;;  %vm962_vm3 = vcmp.eq.f32.partialorder %v961_v15, 8.507059e+37 }
 0x41b   :  { %v1567_v11 = vpop.eup %1566 }
 0x41c   :  { %v971_v20 = vadd.f32 1.0, %v1567_v11 }
 0x41d   :  { %v1569_v21 = vpop.eup %1568 }
 0x41e   :  { %v1571_v26 = vpop.eup %1570  ;;  %v934_v37 = vmul.f32 %v1569_v21, %v932_v58  ;;  %1572 = vrcp.f32 %v971_v20  ;;  %vm939_vm12 = vweird.f32 %v1569_v21  ;;  %v983_v23 = vand.u32 2147483648, %v971_v20 }
 0x41f   :  { %v953_v38 = vmul.f32 %v1571_v26, %v951_v59  ;;  %1574 = vtanh.f32 %v927_v25  ;;  %vm958_vm13 = vweird.f32 %v1571_v26  ;;  %vm940_vm0 = vmor %vm938_vm14, %vm939_vm12  ;;  %vm977_vm5 = vweird.f32 %v971_v20 }
 0x420   :  { %v935_v39 = vsub.f32 1.0, %v934_v37  ;;  %vm959_vm1 = vmor %vm957_vm15, %vm958_vm13  ;;  %v981_v31 = vand.u32 2147483647, %v971_v20  ;;  %v984_v41 = vor.u32 1.1754944e-38, %v983_v23 }
 0x421   :  { %v954_v40 = vsub.f32 1.0, %v953_v38 }
 0x422   :  { %v936_v32 = vmul.f32 %v1569_v21, %v935_v39  ;;  %vm982_vm7 = vcmp.eq.f32.partialorder %v981_v31, 8.507059e+37 }
 0x423   :  { %v955_v30 = vmul.f32 %v1571_v26, %v954_v40 }
 0x424   :  { %v1573_v48 = vpop.eup %1572  ;;  %v937_v49 = vadd.f32 %v1569_v21, %v936_v32 }
 0x425   :  { %v956_v51 = vadd.f32 %v1571_v26, %v955_v30  ;;  %v973_v52 = vmul.f32 %v1573_v48, %v971_v20  ;;  %v1575_v57 = vpop.eup %1574  ;;  %vm978_vm4 = vweird.f32 %v1573_v48 }
 0x426   :  { %v941_v56 = vsel %vm940_vm0, %v1569_v21, %v937_v49  ;;  %vm979_vm6 = vmor %vm977_vm5, %vm978_vm4 }
 0x427   :  { %v946_v60 = vsel %vm943_vm2, %v945_v50, %v941_v56  ;;  %v960_v61 = vsel %vm959_vm1, %v1571_v26, %v956_v51  ;;  %v974_v62 = vsub.f32 1.0, %v973_v52 }
 0x428   :  { %v965_v63 = vsel %vm962_vm3, %v964_v53, %v960_v61  ;;  %v988_v0 = vmul.f32 %v1575_v57, %v946_v60 }
 0x429   :  { %v987_v14 = vmul.f32 %v965_v63, %v2007_v1  ;;  %v975_v12 = vmul.f32 %v1573_v48, %v974_v62  ;;  %v993_v1 = vld [vmem:[#allocation3 + $0xc0] sm:$0xff] }
 0x42b   :  { %v2043_v16 = vadd.f32 %v988_v0, %v987_v14  ;;  %v976_v19 = vadd.f32 %v1573_v48, %v975_v12 }
 0x42d   :  { %1576 = vtanh.f32 %v2043_v16  ;;  %v980_v28 = vsel %vm979_vm6, %v1573_v48, %v976_v19 }
 0x42e   :  { %v985_v44 = vsel %vm982_vm7, %v984_v41, %v980_v28 }
 0x433   :  { %v1577_v27 = vpop.eup %1576 }
 0x434   :  { %v991_v24 = vmul.f32 %v1577_v27, %v985_v44 }
 0x436   :  { %v997_v7 = vpack.c.bf16 %v991_v24, %v991_v24 }
 0x438   :  { %1006 = vmatmul.bf16.vlgmr.msra.gmra.mxu0 %v997_v7  ;;  %1019 = vmatmul.bf16.vlgmr.msra.gmra.mxu1 %v997_v7 }
 0x439   :  { %1032 = vmatmul.bf16.vlgmr.msra.gmra.mxu2 %v997_v7  ;;  %1045 = vmatmul.bf16.vlgmr.msra.gmra.mxu3 %v997_v7  ;;  %v1256_v7 = vld [vmem:[%s2104_s2 + $0x70] sm:$0xff] }
 0x4b5   :  { %v1007_v4 = vpop.f32.mrf.mxu0  ;;  %v1020_v8 = vpop.f32.mrf.mxu1 }
 0x4b6   :  { %v1050_v9 = vadd.f32 %v1007_v4, %v993_v1  ;;  %v1051_v13 = vadd.f32 %v1020_v8, %v994_v6  ;;  %v1255_v1 = vld [vmem:[%s2104_s2 + $0x68] sm:$0xff]  ;;  %v1254_v6 = vld [vmem:[%s2104_s2 + $0x60] sm:$0xff]  ;;  %v1253_v4 = vld [vmem:[%s2104_s2 + $0x58] sm:$0xff] }
 0x4b7   :  { %v1252_v8 = vld [vmem:[%s2104_s2 + $0x50] sm:$0xff] }
 0x4b8   :  { %v1436_v17 = vmul.f32 -1.442695, %v1050_v9  ;;  %v1437_v18 = vmul.f32 -1.442695, %v1051_v13  ;;  %v1251_v9 = vld [vmem:[%s2104_s2 + $0x48] sm:$0xff]  ;;  %v1250_v13 = vld [vmem:[%s2104_s2 + $0x40] sm:$0xff] }
 0x4ba   :  { %1578 = vpow2.f32 %v1436_v17  ;;  %v1249_v17 = vld [vmem:[%s2104_s2 + $0x38] sm:$0xff] }
 0x4bb   :  { %1580 = vpow2.f32 %v1437_v18  ;;  %v1118_v18 = vld [vmem:[#allocation3 + $0xe0] sm:$0xff] }
 0x4bc   :  { %v1033_v29 = vpop.f32.mrf.mxu2  ;;  %v1046_v33 = vpop.f32.mrf.mxu3 }
 0x4bd   :  { %v1053_v34 = vadd.f32 %v1046_v33, %v996_v22  ;;  %v1009_v35 = vpop.f32.mrf.mxu0  ;;  %v1022_v42 = vpop.f32.mrf.mxu1  ;;  %v1052_v20 = vadd.f32 %v1033_v29, %v995_v2  ;;  %v1119_v22 = vld [vmem:[#allocation3 + $0xe8] sm:$0xff] }
 0x4be   :  { %v1248_v29 = vld [vmem:[%s2104_s2 + $0x30] sm:$0xff] }
 0x4bf   :  { %v1438_v43 = vmul.f32 -1.442695, %v1053_v34 }
 0x4c0   :  { %v1579_v46 = vpop.eup %1578 }
 0x4c1   :  { %v1581_v47 = vpop.eup %1580  ;;  %v1057_v54 = vadd.f32 1.0, %v1579_v46  ;;  %1582 = vpow2.f32 %v1438_v43  ;;  %v1247_v43 = vld [vmem:[%s2104_s2 + $0x28] sm:$0xff] }
 0x4c2   :  { %v1076_v55 = vadd.f32 1.0, %v1581_v47 }
 0x4c3   :  { %1584 = vrcp.f32 %v1057_v54  ;;  %v1069_v39 = vand.u32 2147483648, %v1057_v54  ;;  %v1067_v5 = vand.u32 2147483647, %v1057_v54  ;;  %vm1063_vm10 = vweird.f32 %v1057_v54 }
 0x4c4   :  { %1586 = vrcp.f32 %v1076_v55  ;;  %v1035_v58 = vpop.f32.mrf.mxu2  ;;  %v1048_v59 = vpop.f32.mrf.mxu3  ;;  %v1088_v40 = vand.u32 2147483648, %v1076_v55  ;;  %v1086_v36 = vand.u32 2147483647, %v1076_v55  ;;  %vm1082_vm11 = vweird.f32 %v1076_v55 }
 0x4c5   :  { %v1070_v48 = vor.u32 1.1754944e-38, %v1069_v39  ;;  %vm1068_vm14 = vcmp.eq.f32.partialorder %v1067_v5, 8.507059e+37  ;;  %v1121_v58 = vld [vmem:[#allocation3 + $0xf8] sm:$0xff]  ;;  %v1244_v59 = vld [vmem:[%s2104_s2 + $0x10] sm:$0xff] }
 0x4c6   :  { %v1089_v51 = vor.u32 1.1754944e-38, %v1088_v40  ;;  %vm1087_vm15 = vcmp.eq.f32.partialorder %v1086_v36, 8.507059e+37 }
 0x4c7   :  { %v1583_v3 = vpop.eup %1582 }
 0x4c8   :  { %v1096_v10 = vadd.f32 1.0, %v1583_v3 }
 0x4c9   :  { %v1585_v11 = vpop.eup %1584 }
 0x4ca   :  { %v1587_v21 = vpop.eup %1586  ;;  %v1059_v25 = vmul.f32 %v1585_v11, %v1057_v54  ;;  %1588 = vrcp.f32 %v1096_v10  ;;  %vm1064_vm8 = vweird.f32 %v1585_v11  ;;  %v1108_v19 = vand.u32 2147483648, %v1096_v10  ;;  %v1246_v54 = vld [vmem:[%s2104_s2 + $0x20] sm:$0xff] }
 0x4cb   :  { %v1078_v26 = vmul.f32 %v1587_v21, %v1076_v55  ;;  %1590 = vtanh.f32 %v1052_v20  ;;  %vm1083_vm9 = vweird.f32 %v1587_v21  ;;  %vm1065_vm12 = vmor %vm1063_vm10, %vm1064_vm8  ;;  %vm1102_vm1 = vweird.f32 %v1096_v10  ;;  %v1245_v55 = vld [vmem:[%s2104_s2 + $0x18] sm:$0xff] }
 0x4cc   :  { %v1060_v37 = vsub.f32 1.0, %v1059_v25  ;;  %vm1084_vm13 = vmor %vm1082_vm11, %vm1083_vm9  ;;  %v1106_v23 = vand.u32 2147483647, %v1096_v10  ;;  %v1109_v28 = vor.u32 1.1754944e-38, %v1108_v19  ;;  %v1242_v25 = vld [vmem:[%s2104_s2] sm:$0xff] }
 0x4cd   :  { %v1079_v38 = vsub.f32 1.0, %v1078_v26 }
 0x4ce   :  { %v1061_v45 = vmul.f32 %v1585_v11, %v1060_v37  ;;  %vm1107_vm3 = vcmp.eq.f32.partialorder %v1106_v23, 8.507059e+37 }
 0x4cf   :  { %v1080_v32 = vmul.f32 %v1587_v21, %v1079_v38 }
 0x4d0   :  { %v1589_v30 = vpop.eup %1588  ;;  %v1062_v15 = vadd.f32 %v1585_v11, %v1061_v45 }
 0x4d1   :  { %v1081_v49 = vadd.f32 %v1587_v21, %v1080_v32  ;;  %v1098_v50 = vmul.f32 %v1589_v30, %v1096_v10  ;;  %v1591_v53 = vpop.eup %1590  ;;  %vm1103_vm0 = vweird.f32 %v1589_v30  ;;  %v1243_v10 = vld [vmem:[%s2104_s2 + $0x8] sm:$0xff]  ;;  %v1120_v32 = vld [vmem:[#allocation3 + $0xf0] sm:$0xff] }
 0x4d2   :  { %v1066_v52 = vsel %vm1065_vm12, %v1585_v11, %v1062_v15  ;;  %vm1104_vm2 = vmor %vm1102_vm1, %vm1103_vm0  ;;  %vm1282_vm0 = vcmask 7168  }
 0x4d3   :  { %v1071_v56 = vsel %vm1068_vm14, %v1070_v48, %v1066_v52  ;;  %v1085_v57 = vsel %vm1084_vm13, %v1587_v21, %v1081_v49  ;;  %v1099_v60 = vsub.f32 1.0, %v1098_v50 }
 0x4d4   :  { %v1090_v61 = vsel %vm1087_vm15, %v1089_v51, %v1085_v57  ;;  %v1113_v62 = vmul.f32 %v1591_v53, %v1071_v56 }
 0x4d5   :  { %v1112_v63 = vmul.f32 %v1090_v61, %v2043_v16  ;;  %v1100_v0 = vmul.f32 %v1589_v30, %v1099_v60  ;;  %v1257_v16 = vld [vmem:[%s2104_s2 + $0x78] sm:$0xff] }
 0x4d6   :  { %1262 = vmatpush.msra.mxu0 %v1257_v16 }
 0x4d7   :  { %v2047_v14 = vadd.f32 %v1113_v62, %v1112_v63  ;;  %v1101_v12 = vadd.f32 %v1589_v30, %v1100_v0 }
 0x4d8   :  { %1263 = vmatpush.msra.mxu0 %v1256_v7 }
 0x4d9   :  { %1592 = vtanh.f32 %v2047_v14  ;;  %v1105_v31 = vsel %vm1104_vm2, %v1589_v30, %v1101_v12 }
 0x4da   :  { %v1110_v27 = vsel %vm1107_vm3, %v1109_v28, %v1105_v31  ;;  %1264 = vmatpush.msra.mxu0 %v1255_v1 }
 0x4dc   :  { %1265 = vmatpush.msra.mxu0 %v1254_v6 }
 0x4de   :  { %1266 = vmatpush.msra.mxu0 %v1253_v4 }
 0x4df   :  { %v1593_v41 = vpop.eup %1592 }
 0x4e0   :  { %v1116_v44 = vmul.f32 %v1593_v41, %v1110_v27  ;;  %1267 = vmatpush.msra.mxu0 %v1252_v8 }
 0x4e2   :  { %v1122_v24 = vpack.c.bf16 %v1116_v44, %v1116_v44  ;;  %1268 = vmatpush.msra.mxu0 %v1251_v9 }
 0x4e4   :  { %1131 = vmatmul.bf16.vlgmr.msrb.gmra.mxu0 %v1122_v24  ;;  %1144 = vmatmul.bf16.vlgmr.msrb.gmra.mxu1 %v1122_v24 }
 0x4e5   :  { %1157 = vmatmul.bf16.vlgmr.msrb.gmra.mxu2 %v1122_v24  ;;  %1170 = vmatmul.bf16.vlgmr.msrb.gmra.mxu3 %v1122_v24 }
 0x4e6   :  { %1269 = vmatpush.msra.mxu0 %v1250_v13 }
 0x4e8   :  { %1270 = vmatpush.msra.mxu0 %v1249_v17 }
 0x4ea   :  { %1271 = vmatpush.msra.mxu0 %v1248_v29 }
 0x4ec   :  { %1272 = vmatpush.msra.mxu0 %v1247_v43 }
 0x4ee   :  { %1273 = vmatpush.msra.mxu0 %v1246_v54 }
 0x4f0   :  { %1274 = vmatpush.msra.mxu0 %v1245_v55 }
 0x4f2   :  { %1275 = vmatpush.msra.mxu0 %v1244_v59 }
 0x4f4   :  { %1276 = vmatpush.msra.mxu0 %v1243_v10 }
 0x4f6   :  { %1277 = vmatpush.msra.mxu0 %v1242_v25 }
 0x561   :  { %v1132_v33 = vpop.f32.mrf.mxu0  ;;  %v1145_v34 = vpop.f32.mrf.mxu1 }
 0x562   :  { %v1175_v35 = vadd.f32 %v1132_v33, %v1118_v18  ;;  %v1176_v42 = vadd.f32 %v1145_v34, %v1119_v22 }
 0x564   :  { %v1439_v46 = vmul.f32 -1.442695, %v1175_v35  ;;  %v1440_v47 = vmul.f32 -1.442695, %v1176_v42  ;;  %v1481_v35 = vld [vmem:[#allocation2] ss:$0 sm:$0xff] }
 0x566   :  { %1594 = vpow2.f32 %v1439_v46 }
 0x567   :  { %1596 = vpow2.f32 %v1440_v47 }
 0x568   :  { %v1158_v2 = vpop.f32.mrf.mxu2  ;;  %v1171_v3 = vpop.f32.mrf.mxu3 }
 0x569   :  { %v1178_v11 = vadd.f32 %v1171_v3, %v1121_v58  ;;  %v1134_v20 = vpop.f32.mrf.mxu0  ;;  %v1147_v21 = vpop.f32.mrf.mxu1  ;;  %v1177_v48 = vadd.f32 %v1158_v2, %v1120_v32 }
 0x56b   :  { %v1441_v26 = vmul.f32 -1.442695, %v1178_v11 }
 0x56c   :  { %v1595_v37 = vpop.eup %1594 }
 0x56d   :  { %v1597_v38 = vpop.eup %1596  ;;  %v1182_v39 = vadd.f32 1.0, %v1595_v37  ;;  %1598 = vpow2.f32 %v1441_v26 }
 0x56e   :  { %v1201_v40 = vadd.f32 1.0, %v1597_v38 }
 0x56f   :  { %1600 = vrcp.f32 %v1182_v39  ;;  %v1194_v56 = vand.u32 2147483648, %v1182_v39  ;;  %v1192_v61 = vand.u32 2147483647, %v1182_v39  ;;  %vm1188_vm6 = vweird.f32 %v1182_v39 }
 0x570   :  { %1602 = vrcp.f32 %v1201_v40  ;;  %v1160_v45 = vpop.f32.mrf.mxu2  ;;  %v1173_v5 = vpop.f32.mrf.mxu3  ;;  %v1213_v57 = vand.u32 2147483648, %v1201_v40  ;;  %v1211_v63 = vand.u32 2147483647, %v1201_v40  ;;  %vm1207_vm7 = vweird.f32 %v1201_v40 }
 0x571   :  { %v1195_v19 = vor.u32 1.1754944e-38, %v1194_v56  ;;  %vm1193_vm10 = vcmp.eq.f32.partialorder %v1192_v61, 8.507059e+37 }
 0x572   :  { %v1214_v28 = vor.u32 1.1754944e-38, %v1213_v57  ;;  %vm1212_vm11 = vcmp.eq.f32.partialorder %v1211_v63, 8.507059e+37 }
 0x573   :  { %v1599_v36 = vpop.eup %1598 }
 0x574   :  { %v1221_v30 = vadd.f32 1.0, %v1599_v36 }
 0x575   :  { %v1601_v15 = vpop.eup %1600 }
 0x576   :  { %v1603_v49 = vpop.eup %1602  ;;  %v1184_v50 = vmul.f32 %v1601_v15, %v1182_v39  ;;  %1604 = vrcp.f32 %v1221_v30  ;;  %vm1189_vm4 = vweird.f32 %v1601_v15  ;;  %v1233_v13 = vand.u32 2147483648, %v1221_v30 }
 0x577   :  { %v1203_v51 = vmul.f32 %v1603_v49, %v1201_v40  ;;  %1606 = vtanh.f32 %v1177_v48  ;;  %vm1208_vm5 = vweird.f32 %v1603_v49  ;;  %vm1190_vm8 = vmor %vm1188_vm6, %vm1189_vm4  ;;  %vm1227_vm13 = vweird.f32 %v1221_v30 }
 0x578   :  { %v1185_v52 = vsub.f32 1.0, %v1184_v50  ;;  %vm1209_vm9 = vmor %vm1207_vm7, %vm1208_vm5  ;;  %v1231_v17 = vand.u32 2147483647, %v1221_v30  ;;  %v1234_v22 = vor.u32 1.1754944e-38, %v1233_v13 }
 0x579   :  { %v1204_v53 = vsub.f32 1.0, %v1203_v51 }
 0x57a   :  { %v1186_v60 = vmul.f32 %v1601_v15, %v1185_v52  ;;  %vm1232_vm15 = vcmp.eq.f32.partialorder %v1231_v17, 8.507059e+37 }
 0x57b   :  { %v1205_v62 = vmul.f32 %v1603_v49, %v1204_v53 }
 0x57c   :  { %v1605_v0 = vpop.eup %1604  ;;  %v1187_v12 = vadd.f32 %v1601_v15, %v1186_v60 }
 0x57d   :  { %v1206_v23 = vadd.f32 %v1603_v49, %v1205_v62  ;;  %v1223_v31 = vmul.f32 %v1605_v0, %v1221_v30  ;;  %v1607_v27 = vpop.eup %1606  ;;  %vm1228_vm12 = vweird.f32 %v1605_v0 }
 0x57e   :  { %v1191_v41 = vsel %vm1190_vm8, %v1601_v15, %v1187_v12  ;;  %vm1229_vm14 = vmor %vm1227_vm13, %vm1228_vm12 }
 0x57f   :  { %v1196_v44 = vsel %vm1193_vm10, %v1195_v19, %v1191_v41  ;;  %v1210_v24 = vsel %vm1209_vm9, %v1603_v49, %v1206_v23  ;;  %v1224_v16 = vsub.f32 1.0, %v1223_v31 }
 0x580   :  { %v1215_v7 = vsel %vm1212_vm11, %v1214_v28, %v1210_v24  ;;  %v1238_v1 = vmul.f32 %v1607_v27, %v1196_v44 }
 0x581   :  { %v1237_v6 = vmul.f32 %v1215_v7, %v2047_v14  ;;  %v1225_v4 = vmul.f32 %v1605_v0, %v1224_v16 }
 0x583   :  { %v1239_v8 = vadd.f32 %v1238_v1, %v1237_v6  ;;  %v1226_v9 = vadd.f32 %v1605_v0, %v1225_v4 }
 0x585   :  { %1608 = vtanh.f32 %v1239_v8  ;;  %v1230_v18 = vsel %vm1229_vm14, %v1605_v0, %v1226_v9 }
 0x586   :  { %v1235_v33 = vsel %vm1232_vm15, %v1234_v22, %v1230_v18 }
 0x58b   :  { %v1609_v29 = vpop.eup %1608 }
 0x58c   :  { %v1241_v34 = vmul.f32 %v1609_v29, %v1235_v33 }
 0x58e   :  { %1278 = vmatmul.f32.vlgmr.msra.gmra.mxu0 %v1241_v34 }
 0x60b   :  { %v1279_v42 = vpop.f32.mrf.mxu0 }
 0x60c   :  { %v1280_v14 = vadd.f32 %v1481_v35, %v1279_v42 }
 0x60e   :  { %1283 = vst.msk [vmem:[%s2106_s4] sm:$0xff] %vm1282_vm0, %v1280_v14 }
 0x60f   :  { %1288 = vsyncpa [#allocation4], 1 }
 0x610   :  { %1289 = vsyncpa [#allocation6], 1 }

</bundles_post_ra>
